<compile_context>
chip_gen: v7x
topology: tpu7x:2x2x1
jax: 0.10.0
libtpu: 0.0.40
codegen_flags: <defaults>
</compile_context>

<pallas_src>
import math
from functools import partial

import jax
import jax.numpy as jnp
from jax.experimental import pallas as pl
from jax.experimental.pallas import tpu as pltpu


# ------------------------------ Pallas kernel -------------------------------

def _bottleneck_kernel(x_ref, w1_ref, b1_ref, w2_ref, b2_ref, w3_ref, b3_ref,
                       wsc_ref, bsc_ref, o_ref, h1buf_ref, acc_ref, *, H, W):
    """Fused Bottleneck forward for ONE image (stride == 1).

    x_ref    : (1, H*W, CP)  bf16  input, channels zero-padded to CP lanes
    w*_ref   : bf16 conv weights in matmul layout, BN scale already folded in
    b*_ref   : (1, C) f32 BN biases (zero here, kept for generality)
    o_ref    : (1, H*W, EP)  f32   output (padded channels stay zero)
    h1buf_ref: ((H+2)*W, PP) f32   conv1 output with one zero image-row of
                                   padding above and below (for the 3x3 conv)
    acc_ref  : (H*W, PP)     f32   conv2 accumulator
    """
    HW = H * W
    PP = acc_ref.shape[1]

    x = x_ref[0]                                                  # (HW, CP) bf16

    # ---- conv1 (1x1) + bn1 + relu ------------------------------------------
    h1 = jnp.dot(x, w1_ref[...], preferred_element_type=jnp.float32)
    h1 = jnp.maximum(h1 + b1_ref[...], 0.0)                       # (HW, PP) f32

    # place into the row-padded buffer (all offsets/lengths are multiples of W,
    # i.e. sublane aligned since W % 8 == 0)
    h1buf_ref[0:W, :] = jnp.zeros((W, PP), jnp.float32)
    h1buf_ref[W:W + HW, :] = h1
    h1buf_ref[W + HW:2 * W + HW, :] = jnp.zeros((W, PP), jnp.float32)

    # ---- conv2 (3x3, padding=1, stride=1) + bn2 + relu ----------------------
    # out[i, j] += h1[i + di - 1, j + dj - 1] @ w2[di, dj]
    # Row taps (di) are aligned slices of the padded buffer; the +/-1 column
    # taps (dj) are a one-row roll of the flattened image plus an edge mask.
    col = jax.lax.broadcasted_iota(jnp.int32, (HW, PP), 0) % W    # j of each row
    acc_ref[...] = jnp.zeros_like(acc_ref)
    for di in range(3):
        win = h1buf_ref[di * W:di * W + HW, :]                    # (HW, PP) f32
        for dj in range(3):
            if dj == 0:      # needs column j-1: shift rows down, mask j == 0
                v = jnp.where(col == 0, 0.0, pltpu.roll(win, 1, axis=0))
            elif dj == 2:    # needs column j+1: shift rows up (== roll by -1)
                v = jnp.where(col == W - 1, 0.0,
                              pltpu.roll(win, HW - 1, axis=0))
            else:            # centre tap
                v = win
            acc_ref[...] += jnp.dot(v.astype(jnp.bfloat16),
                                    w2_ref[di * 3 + dj],
                                    preferred_element_type=jnp.float32)
    h2 = jnp.maximum(acc_ref[...] + b2_ref[...], 0.0).astype(jnp.bfloat16)

    # ---- conv3 (1x1) + bn3, projection shortcut, residual add, relu ---------
    out = jnp.dot(h2, w3_ref[...], preferred_element_type=jnp.float32)
    out = out + b3_ref[...]
    sc = jnp.dot(x, wsc_ref[...], preferred_element_type=jnp.float32)
    sc = sc + bsc_ref[...]
    o_ref[...] = jnp.maximum(out + sc, 0.0)[None]


# --------------------------------- wrapper ----------------------------------

def bottleneck_forward(x_nchw, params):
    """Bottleneck.forward on an NCHW float32 input; returns NCHW float32."""
    N, cin, H, W = x_nchw.shape
    assert W % 8 == 0 and (H * W) % 8 == 0, "kernel assumes W (and H*W) % 8 == 0"
    CP, PP, EP = params["CP"], params["PP"], params["EP"]
    cout = params["cout"]
    HW = H * W

    # NCHW -> (N, H*W, C), zero-pad channels to a full lane group, cast bf16.
    # (layout plumbing only; all compute happens inside the kernel)
    x = jnp.transpose(x_nchw, (0, 2, 3, 1)).reshape(N, HW, cin)
    x = jnp.pad(x, ((0, 0), (0, 0), (0, CP - cin))).astype(jnp.bfloat16)

    kernel = partial(_bottleneck_kernel, H=H, W=W)
    out = pl.pallas_call(
        kernel,
        out_shape=jax.ShapeDtypeStruct((N, HW, EP), jnp.float32),
        grid=(N,),
        in_specs=[
            pl.BlockSpec((1, HW, CP), lambda n: (n, 0, 0)),   # x (one image)
            pl.BlockSpec((CP, PP), lambda n: (0, 0)),         # conv1 weight
            pl.BlockSpec((1, PP), lambda n: (0, 0)),          # bn1 bias
            pl.BlockSpec((9, PP, PP), lambda n: (0, 0, 0)),   # conv2 weight taps
            pl.BlockSpec((1, PP), lambda n: (0, 0)),          # bn2 bias
            pl.BlockSpec((PP, EP), lambda n: (0, 0)),         # conv3 weight
            pl.BlockSpec((1, EP), lambda n: (0, 0)),          # bn3 bias
            pl.BlockSpec((CP, EP), lambda n: (0, 0)),         # shortcut weight
            pl.BlockSpec((1, EP), lambda n: (0, 0)),          # shortcut bias
        ],
        out_specs=pl.BlockSpec((1, HW, EP), lambda n: (n, 0, 0)),
        scratch_shapes=[
            pltpu.VMEM(((H + 2) * W, PP), jnp.float32),       # row-padded conv1
            pltpu.VMEM((HW, PP), jnp.float32),                # conv2 accumulator
        ],
        compiler_params=pltpu.CompilerParams(
            dimension_semantics=("parallel",)),
    )(x, params["w1"], params["b1"], params["w2"], params["b2"],
      params["w3"], params["b3"], params["wsc"], params["bsc"])

    out = out[:, :, :cout].reshape(N, H, W, cout)
    return jnp.transpose(out, (0, 3, 1, 2))                   # back to NCHW


# ---------------------------- deterministic params --------------------------

def init_bottleneck_params(key, in_planes, planes, stride=1, lane=128):
    """Deterministic Bottleneck parameters in kernel-friendly layout.

    BatchNorm is evaluated with freshly-initialised statistics -> per-channel
    scale = 1/sqrt(1+eps), bias = 0; the scale is folded into the conv weights
    once here so the kernel needs no BN multiply.
    """
    if stride != 1:
        raise NotImplementedError("stride != 1 not supported by this kernel")
    expansion = 4
    cout = expansion * planes
    eps = 1e-5
    bn_scale = 1.0 / math.sqrt(1.0 + eps)

    def rup(c):  # round a channel count up to full lane groups (lane-dense)
        return max(lane, ((c + lane - 1) // lane) * lane)

    CP, PP, EP = rup(in_planes), rup(planes), rup(cout)
    k1, k2, k3, k4 = jax.random.split(key, 4)

    def uni(k, fan_in, shape):
        b = 1.0 / math.sqrt(fan_in)
        return jax.random.uniform(k, shape, jnp.float32, -b, b)

    # conv weights generated directly in matmul layout, BN scale folded in
    w1 = uni(k1, in_planes, (in_planes, planes)) * bn_scale           # 1x1
    w2 = uni(k2, 9 * planes, (9, planes, planes)) * bn_scale          # 3x3 taps
    w3 = uni(k3, planes, (planes, cout)) * bn_scale                   # 1x1
    if in_planes != cout:   # projection shortcut: Conv1x1 + BN
        wsc = uni(k4, in_planes, (in_planes, cout)) * bn_scale
    else:                   # identity shortcut expressed as an identity matmul
        wsc = jnp.eye(in_planes, dtype=jnp.float32)

    def pad2(w, r, c):
        return jnp.pad(w, ((0, r - w.shape[0]), (0, c - w.shape[1])))

    return {
        "in_planes": in_planes, "planes": planes, "cout": cout,
        "CP": CP, "PP": PP, "EP": EP,
        # bf16 matmul operands (f32 accumulation happens in the kernel)
        "w1": pad2(w1, CP, PP).astype(jnp.bfloat16),
        "w2": jnp.pad(w2, ((0, 0), (0, PP - planes), (0, PP - planes))
                      ).astype(jnp.bfloat16),
        "w3": pad2(w3, PP, EP).astype(jnp.bfloat16),
        "wsc": pad2(wsc, CP, EP).astype(jnp.bfloat16),
        # BN biases (beta - mean*scale == 0 for fresh statistics), kept in f32
        "b1": jnp.zeros((1, PP), jnp.float32),
        "b2": jnp.zeros((1, PP), jnp.float32),
        "b3": jnp.zeros((1, EP), jnp.float32),
        "bsc": jnp.zeros((1, EP), jnp.float32),
        # unpadded f32 copies for the pure-JAX reference check
        "ref": {"w1": w1, "w2": w2, "w3": w3, "wsc": wsc},
    }


# ----------------------------- pure-JAX reference ---------------------------

def reference_forward(x_nchw, params):
    """f32 XLA reference of the same Bottleneck math (for correctness check)."""
    r = params["ref"]
    p = params["planes"]
    x = jnp.transpose(x_nchw, (0, 2, 3, 1))                            # NHWC
    h = jax.nn.relu(jnp.einsum("nhwc,cp->nhwp", x, r["w1"]))
    h = jax.lax.conv_general_dilated(
        h, r["w2"].reshape(3, 3, p, p), window_strides=(1, 1),
        padding="SAME", dimension_numbers=("NHWC", "HWIO", "NHWC"))
    h = jax.nn.relu(h)
    out = jnp.einsum("nhwp,pe->nhwe", h, r["w3"])
    out = out + jnp.einsum("nhwc,ce->nhwe", x, r["wsc"])
    out = jax.nn.relu(out)
    return jnp.transpose(out, (0, 3, 1, 2))                            # NCHW


# ----------------------------------- main ------------------------------------

if __name__ == "__main__":
    key = jax.random.PRNGKey(0)
    pkey, xkey = jax.random.split(key)

    # Bottleneck(in_planes=4, planes=8, stride=1): 4 -> 8 -> 8 -> 32 channels,
    # with a projection shortcut (in_planes != expansion * planes).
    N, in_planes, H, W = 2, 4, 16, 16
    planes = 8
    params = init_bottleneck_params(pkey, in_planes, planes, stride=1)

    x = jax.random.normal(xkey, (N, in_planes, H, W), jnp.float32)  # NCHW

    out = jax.block_until_ready(bottleneck_forward(x, params))
    assert out.shape == (N, 4 * planes, H, W) and out.dtype == jnp.float32
    assert bool(jnp.all(jnp.isfinite(out))) and bool(jnp.all(out >= 0.0))

    # correctness check vs. the f32 reference (kernel matmuls use bf16 inputs,
    # hence the loose tolerance)
    ref = jax.block_until_ready(reference_forward(x, params))
    err = float(jnp.max(jnp.abs(out - ref)))
    assert err < 0.1, f"max abs error vs reference: {err}"

    print("KERNEL_OK")
</pallas_src>

<mosaic_0001>
module attributes {stable_mosaic.version = 11 : i64} {
  func.func @_bottleneck_kernel(%arg0: i32, %arg1: memref<1x256x128xbf16, #tpu.memory_space<vmem>>, %arg2: memref<128x128xbf16, #tpu.memory_space<vmem>>, %arg3: memref<1x128xf32, #tpu.memory_space<vmem>>, %arg4: memref<9x128x128xbf16, #tpu.memory_space<vmem>>, %arg5: memref<1x128xf32, #tpu.memory_space<vmem>>, %arg6: memref<128x128xbf16, #tpu.memory_space<vmem>>, %arg7: memref<1x128xf32, #tpu.memory_space<vmem>>, %arg8: memref<128x128xbf16, #tpu.memory_space<vmem>>, %arg9: memref<1x128xf32, #tpu.memory_space<vmem>>, %arg10: memref<1x256x128xf32, #tpu.memory_space<vmem>>, %arg11: memref<288x128xf32, #tpu.memory_space<vmem>>, %arg12: memref<256x128xf32, #tpu.memory_space<vmem>>) attributes {dimension_semantics = [#tpu.dimension_semantics<parallel>], iteration_bounds = array<i64: 2>, scalar_prefetch = 0 : i64, scratch_operands = 2 : i64, tpu.core_type = #tpu.core_type<tc>, window_params = [{transform_indices = @transform_0, window_bounds = array<i64: 1, 256, 128>}, {pipeline_mode = #tpu.pipeline_mode<synchronous>, transform_indices = @transform_1, window_bounds = array<i64: 128, 128>}, {pipeline_mode = #tpu.pipeline_mode<synchronous>, transform_indices = @transform_2, window_bounds = array<i64: 1, 128>}, {pipeline_mode = #tpu.pipeline_mode<synchronous>, transform_indices = @transform_3, window_bounds = array<i64: 9, 128, 128>}, {pipeline_mode = #tpu.pipeline_mode<synchronous>, transform_indices = @transform_4, window_bounds = array<i64: 1, 128>}, {pipeline_mode = #tpu.pipeline_mode<synchronous>, transform_indices = @transform_5, window_bounds = array<i64: 128, 128>}, {pipeline_mode = #tpu.pipeline_mode<synchronous>, transform_indices = @transform_6, window_bounds = array<i64: 1, 128>}, {pipeline_mode = #tpu.pipeline_mode<synchronous>, transform_indices = @transform_7, window_bounds = array<i64: 128, 128>}, {pipeline_mode = #tpu.pipeline_mode<synchronous>, transform_indices = @transform_8, window_bounds = array<i64: 1, 128>}, {transform_indices = @transform_9, window_bounds = array<i64: 1, 256, 128>}]} {
    %c0 = arith.constant 0 : index
    %c0_0 = arith.constant 0 : index
    %c0_1 = arith.constant 0 : index
    %0 = vector.load %arg1[%c0, %c0_0, %c0_1] : memref<1x256x128xbf16, #tpu.memory_space<vmem>>, vector<1x256x128xbf16>
    %1 = vector.shape_cast %0 : vector<1x256x128xbf16> to vector<256x128xbf16>
    %c0_2 = arith.constant 0 : index
    %c0_3 = arith.constant 0 : index
    %2 = vector.load %arg2[%c0_2, %c0_3] : memref<128x128xbf16, #tpu.memory_space<vmem>>, vector<128x128xbf16>
    %cst = arith.constant dense<0.000000e+00> : vector<256x128xf32>
    %3 = tpu.matmul %1, %2, %cst {dimension_numbers = #tpu.dot_dimension_numbers<[1], [0], [0], [1], [0, 0, 1, 1], [], []>} : vector<256x128xbf16>, vector<128x128xbf16>, vector<256x128xf32> -> vector<256x128xf32>
    %c0_4 = arith.constant 0 : index
    %c0_5 = arith.constant 0 : index
    %4 = vector.load %arg3[%c0_4, %c0_5] : memref<1x128xf32, #tpu.memory_space<vmem>>, vector<1x128xf32>
    %5 = vector.broadcast %4 : vector<1x128xf32> to vector<256x128xf32>
    %6 = arith.addf %3, %5 : vector<256x128xf32>
    %cst_6 = arith.constant 0.000000e+00 : f32
    %7 = vector.broadcast %cst_6 : f32 to vector<256x128xf32>
    %8 = arith.maximumf %6, %7 : vector<256x128xf32>
    %cst_7 = arith.constant 0.000000e+00 : f32
    %9 = vector.broadcast %cst_7 : f32 to vector<16x128xf32>
    %c0_8 = arith.constant 0 : index
    %c0_9 = arith.constant 0 : index
    %10 = vector.load %arg11[%c0_8, %c0_9] : memref<288x128xf32, #tpu.memory_space<vmem>>, vector<16x128xf32>
    tpu.vector_store %arg11[%c0_8, %c0_9], %9 {strides = array<i32>} : memref<288x128xf32, #tpu.memory_space<vmem>>, vector<16x128xf32>,
    %c16 = arith.constant 16 : index
    %c0_10 = arith.constant 0 : index
    %11 = vector.load %arg11[%c16, %c0_10] : memref<288x128xf32, #tpu.memory_space<vmem>>, vector<256x128xf32>
    tpu.vector_store %arg11[%c16, %c0_10], %8 {strides = array<i32>} : memref<288x128xf32, #tpu.memory_space<vmem>>, vector<256x128xf32>,
    %cst_11 = arith.constant 0.000000e+00 : f32
    %12 = vector.broadcast %cst_11 : f32 to vector<16x128xf32>
    %c272 = arith.constant 272 : index
    %c0_12 = arith.constant 0 : index
    %13 = vector.load %arg11[%c272, %c0_12] : memref<288x128xf32, #tpu.memory_space<vmem>>, vector<16x128xf32>
    tpu.vector_store %arg11[%c272, %c0_12], %12 {strides = array<i32>} : memref<288x128xf32, #tpu.memory_space<vmem>>, vector<16x128xf32>,
    %14 = tpu.iota {dimensions = array<i32: 0>} : vector<256x128xi32>
    %c16_i32 = arith.constant 16 : i32
    %c0_i32 = arith.constant 0 : i32
    %15 = arith.cmpi eq, %c16_i32, %c0_i32 : i32
    %c1_i32 = arith.constant 1 : i32
    %16 = arith.select %15, %c1_i32, %c16_i32 : i32
    %17 = vector.broadcast %16 : i32 to vector<256x128xi32>
    %18 = arith.remsi %14, %17 : vector<256x128xi32>
    %c0_i32_13 = arith.constant 0 : i32
    %19 = vector.broadcast %c0_i32_13 : i32 to vector<256x128xi32>
    %20 = arith.cmpi ne, %18, %19 : vector<256x128xi32>
    %c0_i32_14 = arith.constant 0 : i32
    %21 = vector.broadcast %c0_i32_14 : i32 to vector<256x128xi32>
    %22 = arith.cmpi slt, %18, %21 : vector<256x128xi32>
    %c0_i32_15 = arith.constant 0 : i32
    %23 = arith.cmpi slt, %16, %c0_i32_15 : i32
    %24 = vector.broadcast %23 : i1 to vector<256x128xi1>
    %25 = vector.broadcast %24 : vector<256x128xi1> to vector<256x128xi1>
    %26 = arith.xori %22, %25 : vector<256x128xi1>
    %27 = arith.andi %26, %20 : vector<256x128xi1>
    %28 = vector.broadcast %16 : i32 to vector<256x128xi32>
    %29 = arith.addi %18, %28 : vector<256x128xi32>
    %30 = arith.select %27, %29, %18 : vector<256x128xi1>, vector<256x128xi32>
    %cst_16 = arith.constant 0.000000e+00 : f32
    %31 = vector.broadcast %cst_16 : f32 to vector<256x128xf32>
    %c0_17 = arith.constant 0 : index
    %c0_18 = arith.constant 0 : index
    %32 = vector.load %arg12[%c0_17, %c0_18] : memref<256x128xf32, #tpu.memory_space<vmem>>, vector<256x128xf32>
    tpu.vector_store %arg12[%c0_17, %c0_18], %31 {strides = array<i32>} : memref<256x128xf32, #tpu.memory_space<vmem>>, vector<256x128xf32>,
    %c0_19 = arith.constant 0 : index
    %c0_20 = arith.constant 0 : index
    %33 = vector.load %arg11[%c0_19, %c0_20] : memref<288x128xf32, #tpu.memory_space<vmem>>, vector<256x128xf32>
    %c0_i32_21 = arith.constant 0 : i32
    %34 = vector.broadcast %c0_i32_21 : i32 to vector<256x128xi32>
    %35 = arith.cmpi eq, %30, %34 : vector<256x128xi32>
    %c1_i32_22 = arith.constant 1 : i32
    %36 = tpu.dynamic_rotate %33 by %c1_i32_22 dim 0 : vector<256x128xf32>, i32 -> vector<256x128xf32>
    %cst_23 = arith.constant 0.000000e+00 : f32
    %37 = vector.broadcast %cst_23 : f32 to vector<256x128xf32>
    %38 = arith.select %35, %37, %36 : vector<256x128xi1>, vector<256x128xf32>
    %c0_24 = arith.constant 0 : index
    %c0_25 = arith.constant 0 : index
    %39 = vector.load %arg12[%c0_24, %c0_25] : memref<256x128xf32, #tpu.memory_space<vmem>>, vector<256x128xf32>
    %40 = arith.truncf %38 : vector<256x128xf32> to vector<256x128xbf16>
    %c0_26 = arith.constant 0 : index
    %c0_27 = arith.constant 0 : index
    %c0_28 = arith.constant 0 : index
    %41 = vector.load %arg4[%c0_26, %c0_27, %c0_28] : memref<9x128x128xbf16, #tpu.memory_space<vmem>>, vector<1x128x128xbf16>
    %42 = vector.shape_cast %41 : vector<1x128x128xbf16> to vector<128x128xbf16>
    %cst_29 = arith.constant dense<0.000000e+00> : vector<256x128xf32>
    %43 = tpu.matmul %40, %42, %cst_29 {dimension_numbers = #tpu.dot_dimension_numbers<[1], [0], [0], [1], [0, 0, 1, 1], [], []>} : vector<256x128xbf16>, vector<128x128xbf16>, vector<256x128xf32> -> vector<256x128xf32>
    %44 = arith.addf %39, %43 : vector<256x128xf32>
    %c0_30 = arith.constant 0 : index
    %c0_31 = arith.constant 0 : index
    %45 = vector.load %arg12[%c0_30, %c0_31] : memref<256x128xf32, #tpu.memory_space<vmem>>, vector<256x128xf32>
    tpu.vector_store %arg12[%c0_30, %c0_31], %44 {strides = array<i32>} : memref<256x128xf32, #tpu.memory_space<vmem>>, vector<256x128xf32>,
    %c0_32 = arith.constant 0 : index
    %c0_33 = arith.constant 0 : index
    %46 = vector.load %arg12[%c0_32, %c0_33] : memref<256x128xf32, #tpu.memory_space<vmem>>, vector<256x128xf32>
    %47 = arith.truncf %33 : vector<256x128xf32> to vector<256x128xbf16>
    %c1 = arith.constant 1 : index
    %c0_34 = arith.constant 0 : index
    %c0_35 = arith.constant 0 : index
    %48 = vector.load %arg4[%c1, %c0_34, %c0_35] : memref<9x128x128xbf16, #tpu.memory_space<vmem>>, vector<1x128x128xbf16>
    %49 = vector.shape_cast %48 : vector<1x128x128xbf16> to vector<128x128xbf16>
    %cst_36 = arith.constant dense<0.000000e+00> : vector<256x128xf32>
    %50 = tpu.matmul %47, %49, %cst_36 {dimension_numbers = #tpu.dot_dimension_numbers<[1], [0], [0], [1], [0, 0, 1, 1], [], []>} : vector<256x128xbf16>, vector<128x128xbf16>, vector<256x128xf32> -> vector<256x128xf32>
    %51 = arith.addf %46, %50 : vector<256x128xf32>
    %c0_37 = arith.constant 0 : index
    %c0_38 = arith.constant 0 : index
    %52 = vector.load %arg12[%c0_37, %c0_38] : memref<256x128xf32, #tpu.memory_space<vmem>>, vector<256x128xf32>
    tpu.vector_store %arg12[%c0_37, %c0_38], %51 {strides = array<i32>} : memref<256x128xf32, #tpu.memory_space<vmem>>, vector<256x128xf32>,
    %c15_i32 = arith.constant 15 : i32
    %53 = vector.broadcast %c15_i32 : i32 to vector<256x128xi32>
    %54 = arith.cmpi eq, %30, %53 : vector<256x128xi32>
    %c255_i32 = arith.constant 255 : i32
    %55 = tpu.dynamic_rotate %33 by %c255_i32 dim 0 : vector<256x128xf32>, i32 -> vector<256x128xf32>
    %cst_39 = arith.constant 0.000000e+00 : f32
    %56 = vector.broadcast %cst_39 : f32 to vector<256x128xf32>
    %57 = arith.select %54, %56, %55 : vector<256x128xi1>, vector<256x128xf32>
    %c0_40 = arith.constant 0 : index
    %c0_41 = arith.constant 0 : index
    %58 = vector.load %arg12[%c0_40, %c0_41] : memref<256x128xf32, #tpu.memory_space<vmem>>, vector<256x128xf32>
    %59 = arith.truncf %57 : vector<256x128xf32> to vector<256x128xbf16>
    %c2 = arith.constant 2 : index
    %c0_42 = arith.constant 0 : index
    %c0_43 = arith.constant 0 : index
    %60 = vector.load %arg4[%c2, %c0_42, %c0_43] : memref<9x128x128xbf16, #tpu.memory_space<vmem>>, vector<1x128x128xbf16>
    %61 = vector.shape_cast %60 : vector<1x128x128xbf16> to vector<128x128xbf16>
    %cst_44 = arith.constant dense<0.000000e+00> : vector<256x128xf32>
    %62 = tpu.matmul %59, %61, %cst_44 {dimension_numbers = #tpu.dot_dimension_numbers<[1], [0], [0], [1], [0, 0, 1, 1], [], []>} : vector<256x128xbf16>, vector<128x128xbf16>, vector<256x128xf32> -> vector<256x128xf32>
    %63 = arith.addf %58, %62 : vector<256x128xf32>
    %c0_45 = arith.constant 0 : index
    %c0_46 = arith.constant 0 : index
    %64 = vector.load %arg12[%c0_45, %c0_46] : memref<256x128xf32, #tpu.memory_space<vmem>>, vector<256x128xf32>
    tpu.vector_store %arg12[%c0_45, %c0_46], %63 {strides = array<i32>} : memref<256x128xf32, #tpu.memory_space<vmem>>, vector<256x128xf32>,
    %c16_47 = arith.constant 16 : index
    %c0_48 = arith.constant 0 : index
    %65 = vector.load %arg11[%c16_47, %c0_48] : memref<288x128xf32, #tpu.memory_space<vmem>>, vector<256x128xf32>
    %c0_i32_49 = arith.constant 0 : i32
    %66 = vector.broadcast %c0_i32_49 : i32 to vector<256x128xi32>
    %67 = arith.cmpi eq, %30, %66 : vector<256x128xi32>
    %c1_i32_50 = arith.constant 1 : i32
    %68 = tpu.dynamic_rotate %65 by %c1_i32_50 dim 0 : vector<256x128xf32>, i32 -> vector<256x128xf32>
    %cst_51 = arith.constant 0.000000e+00 : f32
    %69 = vector.broadcast %cst_51 : f32 to vector<256x128xf32>
    %70 = arith.select %67, %69, %68 : vector<256x128xi1>, vector<256x128xf32>
    %c0_52 = arith.constant 0 : index
    %c0_53 = arith.constant 0 : index
    %71 = vector.load %arg12[%c0_52, %c0_53] : memref<256x128xf32, #tpu.memory_space<vmem>>, vector<256x128xf32>
    %72 = arith.truncf %70 : vector<256x128xf32> to vector<256x128xbf16>
    %c3 = arith.constant 3 : index
    %c0_54 = arith.constant 0 : index
    %c0_55 = arith.constant 0 : index
    %73 = vector.load %arg4[%c3, %c0_54, %c0_55] : memref<9x128x128xbf16, #tpu.memory_space<vmem>>, vector<1x128x128xbf16>
    %74 = vector.shape_cast %73 : vector<1x128x128xbf16> to vector<128x128xbf16>
    %cst_56 = arith.constant dense<0.000000e+00> : vector<256x128xf32>
    %75 = tpu.matmul %72, %74, %cst_56 {dimension_numbers = #tpu.dot_dimension_numbers<[1], [0], [0], [1], [0, 0, 1, 1], [], []>} : vector<256x128xbf16>, vector<128x128xbf16>, vector<256x128xf32> -> vector<256x128xf32>
    %76 = arith.addf %71, %75 : vector<256x128xf32>
    %c0_57 = arith.constant 0 : index
    %c0_58 = arith.constant 0 : index
    %77 = vector.load %arg12[%c0_57, %c0_58] : memref<256x128xf32, #tpu.memory_space<vmem>>, vector<256x128xf32>
    tpu.vector_store %arg12[%c0_57, %c0_58], %76 {strides = array<i32>} : memref<256x128xf32, #tpu.memory_space<vmem>>, vector<256x128xf32>,
    %c0_59 = arith.constant 0 : index
    %c0_60 = arith.constant 0 : index
    %78 = vector.load %arg12[%c0_59, %c0_60] : memref<256x128xf32, #tpu.memory_space<vmem>>, vector<256x128xf32>
    %79 = arith.truncf %65 : vector<256x128xf32> to vector<256x128xbf16>
    %c4 = arith.constant 4 : index
    %c0_61 = arith.constant 0 : index
    %c0_62 = arith.constant 0 : index
    %80 = vector.load %arg4[%c4, %c0_61, %c0_62] : memref<9x128x128xbf16, #tpu.memory_space<vmem>>, vector<1x128x128xbf16>
    %81 = vector.shape_cast %80 : vector<1x128x128xbf16> to vector<128x128xbf16>
    %cst_63 = arith.constant dense<0.000000e+00> : vector<256x128xf32>
    %82 = tpu.matmul %79, %81, %cst_63 {dimension_numbers = #tpu.dot_dimension_numbers<[1], [0], [0], [1], [0, 0, 1, 1], [], []>} : vector<256x128xbf16>, vector<128x128xbf16>, vector<256x128xf32> -> vector<256x128xf32>
    %83 = arith.addf %78, %82 : vector<256x128xf32>
    %c0_64 = arith.constant 0 : index
    %c0_65 = arith.constant 0 : index
    %84 = vector.load %arg12[%c0_64, %c0_65] : memref<256x128xf32, #tpu.memory_space<vmem>>, vector<256x128xf32>
    tpu.vector_store %arg12[%c0_64, %c0_65], %83 {strides = array<i32>} : memref<256x128xf32, #tpu.memory_space<vmem>>, vector<256x128xf32>,
    %c15_i32_66 = arith.constant 15 : i32
    %85 = vector.broadcast %c15_i32_66 : i32 to vector<256x128xi32>
    %86 = arith.cmpi eq, %30, %85 : vector<256x128xi32>
    %c255_i32_67 = arith.constant 255 : i32
    %87 = tpu.dynamic_rotate %65 by %c255_i32_67 dim 0 : vector<256x128xf32>, i32 -> vector<256x128xf32>
    %cst_68 = arith.constant 0.000000e+00 : f32
    %88 = vector.broadcast %cst_68 : f32 to vector<256x128xf32>
    %89 = arith.select %86, %88, %87 : vector<256x128xi1>, vector<256x128xf32>
    %c0_69 = arith.constant 0 : index
    %c0_70 = arith.constant 0 : index
    %90 = vector.load %arg12[%c0_69, %c0_70] : memref<256x128xf32, #tpu.memory_space<vmem>>, vector<256x128xf32>
    %91 = arith.truncf %89 : vector<256x128xf32> to vector<256x128xbf16>
    %c5 = arith.constant 5 : index
    %c0_71 = arith.constant 0 : index
    %c0_72 = arith.constant 0 : index
    %92 = vector.load %arg4[%c5, %c0_71, %c0_72] : memref<9x128x128xbf16, #tpu.memory_space<vmem>>, vector<1x128x128xbf16>
    %93 = vector.shape_cast %92 : vector<1x128x128xbf16> to vector<128x128xbf16>
    %cst_73 = arith.constant dense<0.000000e+00> : vector<256x128xf32>
    %94 = tpu.matmul %91, %93, %cst_73 {dimension_numbers = #tpu.dot_dimension_numbers<[1], [0], [0], [1], [0, 0, 1, 1], [], []>} : vector<256x128xbf16>, vector<128x128xbf16>, vector<256x128xf32> -> vector<256x128xf32>
    %95 = arith.addf %90, %94 : vector<256x128xf32>
    %c0_74 = arith.constant 0 : index
    %c0_75 = arith.constant 0 : index
    %96 = vector.load %arg12[%c0_74, %c0_75] : memref<256x128xf32, #tpu.memory_space<vmem>>, vector<256x128xf32>
    tpu.vector_store %arg12[%c0_74, %c0_75], %95 {strides = array<i32>} : memref<256x128xf32, #tpu.memory_space<vmem>>, vector<256x128xf32>,
    %c32 = arith.constant 32 : index
    %c0_76 = arith.constant 0 : index
    %97 = vector.load %arg11[%c32, %c0_76] : memref<288x128xf32, #tpu.memory_space<vmem>>, vector<256x128xf32>
    %c0_i32_77 = arith.constant 0 : i32
    %98 = vector.broadcast %c0_i32_77 : i32 to vector<256x128xi32>
    %99 = arith.cmpi eq, %30, %98 : vector<256x128xi32>
    %c1_i32_78 = arith.constant 1 : i32
    %100 = tpu.dynamic_rotate %97 by %c1_i32_78 dim 0 : vector<256x128xf32>, i32 -> vector<256x128xf32>
    %cst_79 = arith.constant 0.000000e+00 : f32
    %101 = vector.broadcast %cst_79 : f32 to vector<256x128xf32>
    %102 = arith.select %99, %101, %100 : vector<256x128xi1>, vector<256x128xf32>
    %c0_80 = arith.constant 0 : index
    %c0_81 = arith.constant 0 : index
    %103 = vector.load %arg12[%c0_80, %c0_81] : memref<256x128xf32, #tpu.memory_space<vmem>>, vector<256x128xf32>
    %104 = arith.truncf %102 : vector<256x128xf32> to vector<256x128xbf16>
    %c6 = arith.constant 6 : index
    %c0_82 = arith.constant 0 : index
    %c0_83 = arith.constant 0 : index
    %105 = vector.load %arg4[%c6, %c0_82, %c0_83] : memref<9x128x128xbf16, #tpu.memory_space<vmem>>, vector<1x128x128xbf16>
    %106 = vector.shape_cast %105 : vector<1x128x128xbf16> to vector<128x128xbf16>
    %cst_84 = arith.constant dense<0.000000e+00> : vector<256x128xf32>
    %107 = tpu.matmul %104, %106, %cst_84 {dimension_numbers = #tpu.dot_dimension_numbers<[1], [0], [0], [1], [0, 0, 1, 1], [], []>} : vector<256x128xbf16>, vector<128x128xbf16>, vector<256x128xf32> -> vector<256x128xf32>
    %108 = arith.addf %103, %107 : vector<256x128xf32>
    %c0_85 = arith.constant 0 : index
    %c0_86 = arith.constant 0 : index
    %109 = vector.load %arg12[%c0_85, %c0_86] : memref<256x128xf32, #tpu.memory_space<vmem>>, vector<256x128xf32>
    tpu.vector_store %arg12[%c0_85, %c0_86], %108 {strides = array<i32>} : memref<256x128xf32, #tpu.memory_space<vmem>>, vector<256x128xf32>,
    %c0_87 = arith.constant 0 : index
    %c0_88 = arith.constant 0 : index
    %110 = vector.load %arg12[%c0_87, %c0_88] : memref<256x128xf32, #tpu.memory_space<vmem>>, vector<256x128xf32>
    %111 = arith.truncf %97 : vector<256x128xf32> to vector<256x128xbf16>
    %c7 = arith.constant 7 : index
    %c0_89 = arith.constant 0 : index
    %c0_90 = arith.constant 0 : index
    %112 = vector.load %arg4[%c7, %c0_89, %c0_90] : memref<9x128x128xbf16, #tpu.memory_space<vmem>>, vector<1x128x128xbf16>
    %113 = vector.shape_cast %112 : vector<1x128x128xbf16> to vector<128x128xbf16>
    %cst_91 = arith.constant dense<0.000000e+00> : vector<256x128xf32>
    %114 = tpu.matmul %111, %113, %cst_91 {dimension_numbers = #tpu.dot_dimension_numbers<[1], [0], [0], [1], [0, 0, 1, 1], [], []>} : vector<256x128xbf16>, vector<128x128xbf16>, vector<256x128xf32> -> vector<256x128xf32>
    %115 = arith.addf %110, %114 : vector<256x128xf32>
    %c0_92 = arith.constant 0 : index
    %c0_93 = arith.constant 0 : index
    %116 = vector.load %arg12[%c0_92, %c0_93] : memref<256x128xf32, #tpu.memory_space<vmem>>, vector<256x128xf32>
    tpu.vector_store %arg12[%c0_92, %c0_93], %115 {strides = array<i32>} : memref<256x128xf32, #tpu.memory_space<vmem>>, vector<256x128xf32>,
    %c15_i32_94 = arith.constant 15 : i32
    %117 = vector.broadcast %c15_i32_94 : i32 to vector<256x128xi32>
    %118 = arith.cmpi eq, %30, %117 : vector<256x128xi32>
    %c255_i32_95 = arith.constant 255 : i32
    %119 = tpu.dynamic_rotate %97 by %c255_i32_95 dim 0 : vector<256x128xf32>, i32 -> vector<256x128xf32>
    %cst_96 = arith.constant 0.000000e+00 : f32
    %120 = vector.broadcast %cst_96 : f32 to vector<256x128xf32>
    %121 = arith.select %118, %120, %119 : vector<256x128xi1>, vector<256x128xf32>
    %c0_97 = arith.constant 0 : index
    %c0_98 = arith.constant 0 : index
    %122 = vector.load %arg12[%c0_97, %c0_98] : memref<256x128xf32, #tpu.memory_space<vmem>>, vector<256x128xf32>
    %123 = arith.truncf %121 : vector<256x128xf32> to vector<256x128xbf16>
    %c8 = arith.constant 8 : index
    %c0_99 = arith.constant 0 : index
    %c0_100 = arith.constant 0 : index
    %124 = vector.load %arg4[%c8, %c0_99, %c0_100] : memref<9x128x128xbf16, #tpu.memory_space<vmem>>, vector<1x128x128xbf16>
    %125 = vector.shape_cast %124 : vector<1x128x128xbf16> to vector<128x128xbf16>
    %cst_101 = arith.constant dense<0.000000e+00> : vector<256x128xf32>
    %126 = tpu.matmul %123, %125, %cst_101 {dimension_numbers = #tpu.dot_dimension_numbers<[1], [0], [0], [1], [0, 0, 1, 1], [], []>} : vector<256x128xbf16>, vector<128x128xbf16>, vector<256x128xf32> -> vector<256x128xf32>
    %127 = arith.addf %122, %126 : vector<256x128xf32>
    %c0_102 = arith.constant 0 : index
    %c0_103 = arith.constant 0 : index
    %128 = vector.load %arg12[%c0_102, %c0_103] : memref<256x128xf32, #tpu.memory_space<vmem>>, vector<256x128xf32>
    tpu.vector_store %arg12[%c0_102, %c0_103], %127 {strides = array<i32>} : memref<256x128xf32, #tpu.memory_space<vmem>>, vector<256x128xf32>,
    %c0_104 = arith.constant 0 : index
    %c0_105 = arith.constant 0 : index
    %129 = vector.load %arg12[%c0_104, %c0_105] : memref<256x128xf32, #tpu.memory_space<vmem>>, vector<256x128xf32>
    %c0_106 = arith.constant 0 : index
    %c0_107 = arith.constant 0 : index
    %130 = vector.load %arg5[%c0_106, %c0_107] : memref<1x128xf32, #tpu.memory_space<vmem>>, vector<1x128xf32>
    %131 = vector.broadcast %130 : vector<1x128xf32> to vector<256x128xf32>
    %132 = arith.addf %129, %131 : vector<256x128xf32>
    %cst_108 = arith.constant 0.000000e+00 : f32
    %133 = vector.broadcast %cst_108 : f32 to vector<256x128xf32>
    %134 = arith.maximumf %132, %133 : vector<256x128xf32>
    %135 = arith.truncf %134 : vector<256x128xf32> to vector<256x128xbf16>
    %c0_109 = arith.constant 0 : index
    %c0_110 = arith.constant 0 : index
    %136 = vector.load %arg6[%c0_109, %c0_110] : memref<128x128xbf16, #tpu.memory_space<vmem>>, vector<128x128xbf16>
    %cst_111 = arith.constant dense<0.000000e+00> : vector<256x128xf32>
    %137 = tpu.matmul %135, %136, %cst_111 {dimension_numbers = #tpu.dot_dimension_numbers<[1], [0], [0], [1], [0, 0, 1, 1], [], []>} : vector<256x128xbf16>, vector<128x128xbf16>, vector<256x128xf32> -> vector<256x128xf32>
    %c0_112 = arith.constant 0 : index
    %c0_113 = arith.constant 0 : index
    %138 = vector.load %arg7[%c0_112, %c0_113] : memref<1x128xf32, #tpu.memory_space<vmem>>, vector<1x128xf32>
    %139 = vector.broadcast %138 : vector<1x128xf32> to vector<256x128xf32>
    %140 = arith.addf %137, %139 : vector<256x128xf32>
    %c0_114 = arith.constant 0 : index
    %c0_115 = arith.constant 0 : index
    %141 = vector.load %arg8[%c0_114, %c0_115] : memref<128x128xbf16, #tpu.memory_space<vmem>>, vector<128x128xbf16>
    %cst_116 = arith.constant dense<0.000000e+00> : vector<256x128xf32>
    %142 = tpu.matmul %1, %141, %cst_116 {dimension_numbers = #tpu.dot_dimension_numbers<[1], [0], [0], [1], [0, 0, 1, 1], [], []>} : vector<256x128xbf16>, vector<128x128xbf16>, vector<256x128xf32> -> vector<256x128xf32>
    %c0_117 = arith.constant 0 : index
    %c0_118 = arith.constant 0 : index
    %143 = vector.load %arg9[%c0_117, %c0_118] : memref<1x128xf32, #tpu.memory_space<vmem>>, vector<1x128xf32>
    %144 = vector.broadcast %143 : vector<1x128xf32> to vector<256x128xf32>
    %145 = arith.addf %142, %144 : vector<256x128xf32>
    %146 = arith.addf %140, %145 : vector<256x128xf32>
    %cst_119 = arith.constant 0.000000e+00 : f32
    %147 = vector.broadcast %cst_119 : f32 to vector<256x128xf32>
    %148 = arith.maximumf %146, %147 : vector<256x128xf32>
    %149 = vector.shape_cast %148 : vector<256x128xf32> to vector<1x256x128xf32>
    %c0_120 = arith.constant 0 : index
    %c0_121 = arith.constant 0 : index
    %c0_122 = arith.constant 0 : index
    %150 = vector.load %arg10[%c0_120, %c0_121, %c0_122] : memref<1x256x128xf32, #tpu.memory_space<vmem>>, vector<1x256x128xf32>
    tpu.vector_store %arg10[%c0_120, %c0_121, %c0_122], %149 {strides = array<i32>} : memref<1x256x128xf32, #tpu.memory_space<vmem>>, vector<1x256x128xf32>,
    return
  }
  func.func @transform_0(%arg0: i32) -> (i32, i32, i32) {
    %c0_i32 = arith.constant 0 : i32
    %c0_i32_0 = arith.constant 0 : i32
    %c0_i32_1 = arith.constant 0 : i32
    return %arg0, %c0_i32, %c0_i32_0 : i32, i32, i32
  }
  func.func @transform_1(%arg0: i32) -> (i32, i32) {
    %c0_i32 = arith.constant 0 : i32
    %c0_i32_0 = arith.constant 0 : i32
    %c0_i32_1 = arith.constant 0 : i32
    return %c0_i32, %c0_i32_0 : i32, i32
  }
  func.func @transform_2(%arg0: i32) -> (i32, i32) {
    %c0_i32 = arith.constant 0 : i32
    %c0_i32_0 = arith.constant 0 : i32
    %c0_i32_1 = arith.constant 0 : i32
    return %c0_i32, %c0_i32_0 : i32, i32
  }
  func.func @transform_3(%arg0: i32) -> (i32, i32, i32) {
    %c0_i32 = arith.constant 0 : i32
    %c0_i32_0 = arith.constant 0 : i32
    %c0_i32_1 = arith.constant 0 : i32
    %c0_i32_2 = arith.constant 0 : i32
    return %c0_i32, %c0_i32_0, %c0_i32_1 : i32, i32, i32
  }
  func.func @transform_4(%arg0: i32) -> (i32, i32) {
    %c0_i32 = arith.constant 0 : i32
    %c0_i32_0 = arith.constant 0 : i32
    %c0_i32_1 = arith.constant 0 : i32
    return %c0_i32, %c0_i32_0 : i32, i32
  }
  func.func @transform_5(%arg0: i32) -> (i32, i32) {
    %c0_i32 = arith.constant 0 : i32
    %c0_i32_0 = arith.constant 0 : i32
    %c0_i32_1 = arith.constant 0 : i32
    return %c0_i32, %c0_i32_0 : i32, i32
  }
  func.func @transform_6(%arg0: i32) -> (i32, i32) {
    %c0_i32 = arith.constant 0 : i32
    %c0_i32_0 = arith.constant 0 : i32
    %c0_i32_1 = arith.constant 0 : i32
    return %c0_i32, %c0_i32_0 : i32, i32
  }
  func.func @transform_7(%arg0: i32) -> (i32, i32) {
    %c0_i32 = arith.constant 0 : i32
    %c0_i32_0 = arith.constant 0 : i32
    %c0_i32_1 = arith.constant 0 : i32
    return %c0_i32, %c0_i32_0 : i32, i32
  }
  func.func @transform_8(%arg0: i32) -> (i32, i32) {
    %c0_i32 = arith.constant 0 : i32
    %c0_i32_0 = arith.constant 0 : i32
    %c0_i32_1 = arith.constant 0 : i32
    return %c0_i32, %c0_i32_0 : i32, i32
  }
  func.func @transform_9(%arg0: i32) -> (i32, i32, i32) {
    %c0_i32 = arith.constant 0 : i32
    %c0_i32_0 = arith.constant 0 : i32
    %c0_i32_1 = arith.constant 0 : i32
    return %arg0, %c0_i32, %c0_i32_0 : i32, i32, i32
  }
}

</mosaic_0001>

<bundles_post_ra>
// kernel: tpu_custom_call.1
= control target key start
LH: loop header
LB: loop body
LE: loop exit
PB: predicated region body
PF: predicated region fallthrough
CT: control target
= control target key end

     0   :  { %s9593_s0 = inlined_call_operand.hbm [shape: bf16[2,256,128], index: 0, kind: input, shape index: {}]   ;;  %s9594_s1 = inlined_call_operand.hbm [shape: bf16[128,128], index: 1, kind: input, shape index: {}]   ;;  %s9595_s2 = inlined_call_operand.vmem [shape: f32[1,128], index: 2, kind: input, shape index: {}]   ;;  %s9596_s3 = inlined_call_operand.hbm [shape: bf16[9,128,128], index: 3, kind: input, shape index: {}]   ;;  %s9597_s4 = inlined_call_operand.vmem [shape: f32[1,128], index: 4, kind: input, shape index: {}]   ;;  %s9598_s5 = inlined_call_operand.hbm [shape: bf16[128,128], index: 5, kind: input, shape index: {}]   ;;  %s9599_s6 = inlined_call_operand.vmem [shape: f32[1,128], index: 6, kind: input, shape index: {}]   ;;  %s9600_s7 = inlined_call_operand.hbm [shape: bf16[128,128], index: 7, kind: input, shape index: {}]   ;;  %s9601_s8 = inlined_call_operand.vmem [shape: f32[1,128], index: 8, kind: input, shape index: {}]   ;;  %s9602_s9 = inlined_call_operand.hbm [shape: f32[2,256,128], index: 9, kind: output, shape index: {}]  }
   0x1   :  { %9673 = sst [smem:[#allocation50_spill]] %s9602_s9 }
   0x2   :  { %14 = vsyncpa [#allocation5], 0 }
   0x3   :  { %16 = vsyncpa [#allocation5 + $0x1], 0 }
   0x4   :  { %17 = vsyncpa [#allocation8], 0 }
   0x5   :  { %18 = vsyncpa [#allocation11], 0 }
   0x6   :  { %19 = vsyncpa [#allocation6], 0 }
   0x7   :  { %21 = vsyncpa [#allocation6 + $0x1], 0  ;;  %s8145_s30 = smov 0   ;;  %s8147_s10 = smov 0  }
   0x8   :  { %s8149_s11 = smov 0   ;;  %s8151_s12 = smov 0  }
   0x9 LB: > { %9674 = sst [smem:[#allocation18_spill]] %s8068_s30  ;;  %s8166_s13 = sadd.s32 4294967295, %s8080_s12   ;;  %s8080_s12 = sphi %s8151_s12, %s9875_s12   ;;  %s8076_s11 = sphi %s8149_s11, %s9874_s11   ;;  %s8072_s10 = sphi %s8147_s10, %s9873_s10   ;;  %s8068_s30 = sphi %s8145_s30, %s9872_s30  }
   0xa   : > { %s5870_s14 = sadd.s32 4294967294, %s8080_s12   ;;  %p47_p0 = scmp.ne.s32.totalorder %s8072_s10, %s8068_s30 }
   0xb   : > { %p9603_p1 = scmp.eq.s32.totalorder %s8166_s13, 0  ;;  %p245_p3 = scmp.eq.s32.totalorder %s5870_s14, 1 }
   0xc   : > { %p5871_p5 = scmp.ge.s32.totalorder %s8080_s12, 1  ;;  %p252_p7 = scmp.lt.s32.totalorder %s8080_s12, 3 }
   0xd   : > { %p8175_p4 = por %p9603_p1, %p47_p0  ;;  %p8180_p6 = por %p245_p3, %p47_p0 }
   0xe   : > { %p8185_p8 = pnand %p5871_p5, %p252_p7  ;;  %s8082_s18 = smov [#allocation7]  }
   0xf   : > { %s9675_s15 = scalar_select %p8175_p4, 1, 0 }
  0x10   : > { %s9676_s16 = scalar_select %p8180_p6, 1, 0 }
  0x11   : > { %s9678_s17 = scalar_select %p8185_p8, 1, 0 }
  0x12   : > { %9677 = sst [smem:[#allocation19_spill]] %s9676_s16  ;;  %s264_s19 = sshll.u32 %s8082_s18, 4  ;;  %s8189_s19 = int_to_ptr.vmem [resolvable:$true] %s264_s19 }
  0x13   : > { %p7662_p9 = pneg %p8185_p8  ;;  %s8083_s21 = smov [#allocation10]  }
  0x14   : > { %s296_s22 = sshll.u32 %s8083_s21, 4  ;;  %s8084_s23 = smov [#allocation9]   ;;  %s8200_s22 = int_to_ptr.vmem [resolvable:$true] %s296_s22 }
  0x15   : > { %p8196_p11 = pnand %p7662_p9, %p9603_p1  ;;  %s8202_s24 = sshll.u32 %s8084_s23, 4  ;;  %s281_s24 = int_to_ptr.vmem [resolvable:$true] %s8202_s24 }
  0x16   : > { %s7864_s27 = scalar_lea.hbm %s9594_s1, 1024 }
  0x17   : > { %p7865_p12 = scmp.ne.s32.totalorder %s9594_s1, %s7864_s27  ;;  %p8212_p13 = pneg %p8196_p11 }
  0x18   : > { %p7871_p5 = scmp.lt.u32.totalorder %s7864_s27, %s9594_s1 }
  0x19   : > { %p7867_p0 = pnand %p8212_p13, %p7865_p12 }
  0x1b   : > { %p7868_p3 = pneg %p7867_p0 }
  0x1d   : > { %p7873_p7 = pnand %p7871_p5, %p7868_p3 }
  0x1f   : > { %7876 = shalt.err (!%p7873_p7)
}
  0x20   : > { %s7877_s23 = scalar_lea.vmem %s8189_s19, 1024  ;;  %p7885_p2 = scmp.lt.s32.totalorder %s8189_s19, %s8189_s19 }
  0x21   : > { %p7878_p9 = scmp.ne.s32.totalorder %s8189_s19, %s7877_s23  ;;  %p7886_p6 = scmp.lt.s32.totalorder %s7877_s23, %s7877_s23 }
  0x23   : > { %p7880_p10 = pnand %p7878_p9, %p8212_p13  ;;  %p7887_p12 = por %p7886_p6, %p7885_p2 }
  0x25   : > { %p7881_p1 = pneg %p7880_p10 }
  0x27   : > { %p7888_p0 = pnand %p7887_p12, %p7881_p1 }
  0x29   : > { %7891 = shalt.err (!%p7888_p0)
}
  0x2a   : > { %s8085_s25 = smov 64   ;;  %s8086_s26 = smov 4  }
  0x2b   : > { %7665 = dma.hbm_to_vmem [thread:$0]  (!%p8196_p11), %s9594_s1, 1024, %s8189_s19, [#allocation8], %s8085_s25, %s8085_s25, %s8086_s26  }
  0x2c   : > { %s7892_s21 = scalar_lea.hbm %s9598_s5, 1024 }
  0x2d   : > { %p7893_p1 = scmp.ne.s32.totalorder %s9598_s5, %s7892_s21  ;;  %p7899_p10 = scmp.lt.u32.totalorder %s7892_s21, %s9598_s5 }
  0x2f   : > { %p7895_p2 = pnand %p7893_p1, %p8212_p13 }
  0x31   : > { %p7896_p6 = pneg %p7895_p2 }
  0x33   : > { %p7901_p3 = pnand %p7899_p10, %p7896_p6 }
  0x35   : > { %7904 = shalt.err (!%p7901_p3)
}
  0x36   : > { %s7905_s19 = scalar_lea.vmem %s8200_s22, 1024  ;;  %p7913_p12 = scmp.lt.s32.totalorder %s8200_s22, %s8200_s22 }
  0x37   : > { %p7906_p5 = scmp.ne.s32.totalorder %s8200_s22, %s7905_s19  ;;  %p7914_p0 = scmp.lt.s32.totalorder %s7905_s19, %s7905_s19 }
  0x39   : > { %p7908_p7 = pnand %p7906_p5, %p8212_p13  ;;  %p7915_p1 = por %p7914_p0, %p7913_p12 }
  0x3b   : > { %p7909_p9 = pneg %p7908_p7 }
  0x3d   : > { %p7916_p2 = pnand %p7915_p1, %p7909_p9 }
  0x3f   : > { %7919 = shalt.err (!%p7916_p2)
}
  0x40   : > { %7671 = dma.hbm_to_vmem [thread:$0]  (!%p8196_p11), %s9598_s5, 1024, %s8200_s22, [#allocation11], %s8085_s25, %s8085_s25, %s8086_s26  }
  0x41   : > { %s7920_s28 = scalar_lea.hbm %s9596_s3, 9216 }
  0x42   : > { %p7921_p6 = scmp.ne.s32.totalorder %s9596_s3, %s7920_s28  ;;  %p7927_p5 = scmp.lt.u32.totalorder %s7920_s28, %s9596_s3 }
  0x44   : > { %p7923_p10 = pnand %p7921_p6, %p8212_p13 }
  0x46   : > { %p7924_p3 = pneg %p7923_p10 }
  0x48   : > { %p7929_p7 = pnand %p7927_p5, %p7924_p3 }
  0x4a   : > { %7932 = shalt.err (!%p7929_p7)
}
  0x4b   : > { %s7933_s19 = scalar_lea.vmem %s281_s24, 9216  ;;  %p7941_p1 = scmp.lt.s32.totalorder %s281_s24, %s281_s24 }
  0x4c   : > { %p7934_p9 = scmp.ne.s32.totalorder %s281_s24, %s7933_s19  ;;  %p7942_p2 = scmp.lt.s32.totalorder %s7933_s19, %s7933_s19 }
  0x4e   : > { %p7936_p12 = pnand %p7934_p9, %p8212_p13  ;;  %p7943_p4 = por %p7942_p2, %p7941_p1 }
  0x50   : > { %p7937_p0 = pneg %p7936_p12 }
  0x52   : > { %p7944_p8 = pnand %p7943_p4, %p7937_p0 }
  0x54   : > { %7947 = shalt.err (!%p7944_p8)
}
  0x55   : > { %7668 = dma.hbm_to_vmem [thread:$0]  (!%p8196_p11), %s9596_s3, 9216, %s281_s24, [#allocation8], %s8085_s25, %s8085_s25, %s8086_s26  }
  0x56   : > { %s8087_s30 = smov [#allocation12]   ;;  %s7948_s29 = scalar_lea.hbm %s9600_s7, 1024 }
  0x57   : > { %s312_s16 = sshll.u32 %s8087_s30, 4  ;;  %p7949_p4 = scmp.ne.s32.totalorder %s9600_s7, %s7948_s29  ;;  %s313_s16 = int_to_ptr.vmem [resolvable:$true] %s312_s16 }
  0x58   : > { %p7955_p10 = scmp.lt.u32.totalorder %s7948_s29, %s9600_s7 }
  0x59   : > { %p7951_p8 = pnand %p7949_p4, %p8212_p13 }
  0x5b   : > { %p7952_p6 = pneg %p7951_p8 }
  0x5d   : > { %p7957_p3 = pnand %p7955_p10, %p7952_p6 }
  0x5f   : > { %7960 = shalt.err (!%p7957_p3)
}
  0x60   : > { %s7961_s24 = scalar_lea.vmem %s313_s16, 1024  ;;  %p7969_p12 = scmp.lt.s32.totalorder %s313_s16, %s313_s16 }
  0x61   : > { %p7962_p5 = scmp.ne.s32.totalorder %s313_s16, %s7961_s24  ;;  %p7970_p0 = scmp.lt.s32.totalorder %s7961_s24, %s7961_s24 }
  0x63   : > { %p7964_p7 = pnand %p7962_p5, %p8212_p13  ;;  %p7971_p1 = por %p7970_p0, %p7969_p12 }
  0x65   : > { %p7965_p9 = pneg %p7964_p7 }
  0x67   : > { %p7972_p2 = pnand %p7971_p1, %p7965_p9 }
  0x69   : > { %7975 = shalt.err (!%p7972_p2)
}
  0x6a   : > { %7674 = dma.hbm_to_vmem [thread:$0]  (!%p8196_p11), %s9600_s7, 1024, %s313_s16, [#allocation11], %s8085_s25, %s8085_s25, %s8086_s26  }
  0x6b   : > { %s8306_s14 = sadd.s32 1, %s8080_s12   ;;  %s34_s20 = sadd.s32 1, %s8076_s11 }
  0x6c   : > { %s31_s30 = ssub.s32 %s8080_s12, %s8306_s14  ;;  %p41_p13 = scmp.ne.s32.totalorder %s8076_s11, %s8072_s10 }
  0x6d   : > { %p32_p4 = scmp.eq.s32.totalorder %s31_s30, 0  ;;  %p42_p8 = scmp.eq.s32.totalorder %s8080_s12, 0 }
  0x6e   : > { %p9681_p6 = scmp.eq.s32.totalorder %s8166_s13, 1  ;;  %p7687_p3 = scmp.lt.s32.totalorder %s8080_s12, 2 }
  0x6f   : > { %s8322_s28 = scalar_select %p32_p4, %s8076_s11, %s34_s20  }
  0x70   : > { %p8316_p10 = por %p9681_p6, %p41_p13  ;;  %p43_p5 = por %p42_p8, %p41_p13 }
  0x71   : > { %s329_s29 = sand.u32 1, %s8076_s11   ;;  %s6392_s16 = sshll.u32 %s8080_s12, 11 }
  0x72   : > { %s5877_s18 = sshll.u32 %s329_s29, 7  ;;  %s8329_s19 = scalar_lea.hbm %s9593_s0, %s6392_s16 }
  0x73   : > { %s333_s24 = scalar_lea.vmem [#allocation4], %s5877_s18  ;;  %p8333_p11 = pnand %p7687_p3, %p43_p5 }
  0x74   : > { %s340_s22 = sshll.u32 %s333_s24, 4  ;;  %s8337_s20 = scalar_lea.sflag [#allocation5], %s329_s29  ;;  %s8331_s22 = int_to_ptr.vmem [resolvable:$true] %s340_s22 }
  0x75   : > { %s7976_s30 = scalar_lea.hbm %s8329_s19, 2048  ;;  %p7978_p9 = pneg %p8333_p11 }
  0x76   : > { %p7977_p7 = scmp.ne.s32.totalorder %s8329_s19, %s7976_s30  ;;  %s7981_s21 = scalar_lea.hbm %s9593_s0, 4096 }
  0x77   : > { %p7982_p1 = scmp.lt.u32.totalorder %s8329_s19, %s9593_s0  ;;  %p7983_p2 = scmp.lt.u32.totalorder %s7981_s21, %s7976_s30 }
  0x78   : > { %p7979_p12 = pnand %p7978_p9, %p7977_p7  ;;  %p7985_p4 = scmp.lt.u32.totalorder %s7976_s30, %s8329_s19 }
  0x79   : > { %p7984_p13 = por %p7983_p2, %p7982_p1 }
  0x7a   : > { %p7980_p0 = pneg %p7979_p12 }
  0x7b   : > { %p7986_p8 = por %p7985_p4, %p7984_p13 }
  0x7d   : > { %p7987_p6 = pnand %p7986_p8, %p7980_p0 }
  0x7f   : > { %7990 = shalt.err (!%p7987_p6)
}
  0x80   : > { %s7991_s29 = scalar_lea.vmem %s8331_s22, 2048  ;;  %s8088_s18 = smov [#allocation4]  }
  0x81   : > { %p7992_p3 = scmp.ne.s32.totalorder %s8331_s22, %s7991_s29  ;;  %s7996_s16 = sshll.u32 %s8088_s18, 4  ;;  %s7997_s16 = int_to_ptr.vmem [resolvable:$false] %s7996_s16 }
  0x82   : > { %s7998_s23 = scalar_lea.vmem %s7997_s16, 4096  ;;  %p7999_p12 = scmp.lt.s32.totalorder %s8331_s22, %s7997_s16 }
  0x83   : > { %p7994_p5 = pnand %p7992_p3, %p7978_p9  ;;  %p8000_p1 = scmp.lt.s32.totalorder %s7998_s23, %s7991_s29 }
  0x85   : > { %p7995_p7 = pneg %p7994_p5  ;;  %p8001_p2 = por %p8000_p1, %p7999_p12 }
  0x87   : > { %p8002_p13 = pnand %p8001_p2, %p7995_p7 }
  0x89   : > { %8005 = shalt.err (!%p8002_p13)
}
  0x8a   : > { %7678 = dma.hbm_to_vmem [thread:$0]  (!%p8333_p11), %s8329_s19, 2048, %s8331_s22, %s8337_s20, %s8085_s25, %s8085_s25, %s8086_s26  }
  0x8b   : > { %p9684_p9 = scmp.ne.s32.totalorder %s9678_s17, 0 }
  0x8d   : > { %352 = sbr.rel (%p9684_p9) target bundleno = 1370 (0x55a), region = 56 }
  0x94   : > { %s8371_s30 = sand.u32 1, %s8072_s10   ;;  %p9685_p0 = scmp.ne.s32.totalorder %s9675_s15, 0 }
  0x95   : > { %s5881_s21 = sshll.u32 %s8371_s30, 7  ;;  %s355_s24 = scalar_lea.sflag [#allocation5], %s8371_s30 }
  0x96   : > { %s8375_s29 = scalar_lea.vmem [#allocation4], %s5881_s21 }
  0x97   : > { %8051 = dma.done.wait (%p9685_p0), %s355_s24, 2048  }
  0x98   : > { %8053 = vsyncadd (%p9685_p0), %s355_s24, 4294965248  ;;  %p9686_p11 = scmp.eq.s32.totalorder %s8166_s13, 0 }
  0x9a   : > { %8055 = dma.done.wait (%p9686_p11), [#allocation8], 10240   ;;  %p9687_p4 = pmov %p9686_p11 }
  0x9c   : > { %8057 = vsyncadd (%p9687_p4), [#allocation8], 4294957056  ;;  %p9688_p8 = pmov %p9687_p4 }
  0x9d   : > { %p9689_p6 = pmov %p9687_p4 }
  0x9e   : > { %8059 = dma.done.wait (%p9688_p8), [#allocation11], 2048  }
  0x9f   : > { %8061 = vsyncadd (%p9689_p6), [#allocation11], 4294965248  ;;  %v7736_v0 = vld [vmem:[#allocation7] sm:$0xff]   ;;  %v7737_v1 = vld [vmem:[#allocation7 + $0x8] sm:$0xff]   ;;  %v838_v42 = vlaneseq  ;;  %v8089_v53 = vmov 0.0   ;;  %vm9633_vm5 = vmmov 1  }
  0xa0   : > { %6714 = vmatprep.subr.bf16.mxu0 %v7736_v0  ;;  %v7738_v2 = vld [vmem:[#allocation7 + $0x10] sm:$0xff]   ;;  %v7739_v3 = vld [vmem:[#allocation7 + $0x18] sm:$0xff]   ;;  %v7744_v4 = vld [vmem:[%s8375_s29] sm:$0xff]   ;;  %v8421_v54 = vrot.slane %v8089_v53, 7  ;;  %v8426_v59 = vrot.slane %v8089_v53, 1  ;;  %s5886_s18 = sshll.u32 %s8371_s30, 8 }
  0xa1   : > { %6715 = vmatpush3.bf16.msra.mxu0 %v7736_v0  ;;  %6730 = vmatprep.mubr.bf16.mxu0 %v7744_v4  ;;  %v7740_v5 = vld [vmem:[#allocation7 + $0x20] sm:$0xff]   ;;  %v7741_v6 = vld [vmem:[#allocation7 + $0x28] sm:$0xff]   ;;  %v7742_v7 = vld [vmem:[#allocation7 + $0x30] sm:$0xff]   ;;  %v8416_v45 = vshrl.u32 %v838_v42, 7  ;;  %s9480_s16 = scalar_lea.vmem [#allocation13], %s5886_s18  ;;  %s6393_s23 = sshll.u32 %s8166_s13, 12 }
  0xa2   : > { %6716 = vmatprep.subr.bf16.mxu0 %v7737_v1  ;;  %v7743_v8 = vld [vmem:[#allocation7 + $0x38] sm:$0xff]   ;;  %v7745_v9 = vld [vmem:[%s8375_s29 + $0x8] sm:$0xff]   ;;  %v7746_v10 = vld [vmem:[%s8375_s29 + $0x10] sm:$0xff]   ;;  %9690 = vst [vmem:[#allocation20_spill] sm:$0xff] %v8426_v59  ;;  %s5759_s21 = sshll.u32 %s9480_s16, 4  ;;  %s9867_s15 = sld [smem:[#allocation50_spill]]  ;;  %s9546_s21 = int_to_ptr.vmem [resolvable:$true] %s5759_s21 }
  0xa3   : > { %v7747_v11 = vld [vmem:[%s8375_s29 + $0x18] sm:$0xff]   ;;  %v7748_v12 = vld [vmem:[%s8375_s29 + $0x20] sm:$0xff]   ;;  %v7749_v13 = vld [vmem:[%s8375_s29 + $0x28] sm:$0xff]   ;;  %vm1383_vm0 = vcmp.lt.s32.totalorder %v8416_v45, 1  ;;  %vm2187_vm1 = vcmp.lt.s32.totalorder %v8416_v45, 7  ;;  %s5746_s13 = scalar_lea.sflag [#allocation6], %s8371_s30 }
  0xa4   : > { %v7750_v14 = vld [vmem:[%s8375_s29 + $0x30] sm:$0xff]   ;;  %v7751_v15 = vld [vmem:[%s8375_s29 + $0x38] sm:$0xff]   ;;  %v7752_v16 = vld [vmem:[%s8375_s29 + $0x40] sm:$0xff]   ;;  %s8006_s25 = scalar_lea.vmem %s9546_s21, 4096  ;;  %s8092_s26 = smov [#allocation13]  }
  0xa5   : > { %6717 = vmatpush3.bf16.msra.mxu0 %v7737_v1  ;;  %v7753_v17 = vld [vmem:[%s8375_s29 + $0x48] sm:$0xff]   ;;  %v7754_v18 = vld [vmem:[%s8375_s29 + $0x50] sm:$0xff]   ;;  %v7755_v19 = vld [vmem:[%s8375_s29 + $0x58] sm:$0xff]   ;;  %p8007_p3 = scmp.ne.s32.totalorder %s9546_s21, %s8006_s25  ;;  %s8010_s19 = sshll.u32 %s8092_s26, 4  ;;  %s8011_s19 = int_to_ptr.vmem [resolvable:$false] %s8010_s19 }
  0xa6   : > { %6718 = vmatprep.subr.bf16.mxu0 %v7738_v2  ;;  %v7756_v20 = vld [vmem:[%s8375_s29 + $0x60] sm:$0xff]   ;;  %v7757_v21 = vld [vmem:[%s8375_s29 + $0x68] sm:$0xff]   ;;  %v7758_v22 = vld [vmem:[%s8375_s29 + $0x70] sm:$0xff]   ;;  %s8012_s22 = scalar_lea.vmem %s8011_s19, 8192  ;;  %p8013_p12 = scmp.lt.s32.totalorder %s9546_s21, %s8011_s19 }
  0xa7   : > { %v7759_v23 = vld [vmem:[%s8375_s29 + $0x78] sm:$0xff]   ;;  %v7760_v24 = vld [vmem:[#allocation9 + $0xc0] sm:$0xff]   ;;  %v7762_v26 = vld [vmem:[#allocation9 + $0xc8] sm:$0xff]   ;;  %p8008_p5 = pnand %p8007_p3, %p8316_p10  ;;  %p8014_p1 = scmp.lt.s32.totalorder %s8012_s22, %s8006_s25 }
  0xa8   : > { %v7761_v25 = vld [vmem:[#allocation9] sm:$0xff]   ;;  %6906 = vmatprep.subr.bf16.mxu1 %v7760_v24  ;;  %v7763_v27 = vld [vmem:[#allocation9 + $0x8] sm:$0xff]   ;;  %v7764_v28 = vld [vmem:[#allocation9 + $0xd0] sm:$0xff]   ;;  %s9544_s17 = scalar_lea.hbm %s9867_s15, %s6393_s23 }
  0xa9   : > { %6719 = vmatpush3.bf16.msra.mxu0 %v7738_v2  ;;  %6907 = vmatpush3.bf16.msra.mxu1 %v7760_v24  ;;  %v7765_v29 = vld [vmem:[#allocation9 + $0x10] sm:$0xff]   ;;  %v7766_v30 = vld [vmem:[#allocation9 + $0xd8] sm:$0xff]   ;;  %v7768_v32 = vld [vmem:[#allocation9 + $0xe0] sm:$0xff]   ;;  %p8009_p7 = pneg %p8008_p5  ;;  %p8015_p2 = por %p8014_p1, %p8013_p12 }
  0xaa   : > { %6720 = vmatprep.subr.bf16.mxu0 %v7739_v3  ;;  %6908 = vmatprep.subr.bf16.mxu1 %v7762_v26  ;;  %v7767_v31 = vld [vmem:[#allocation9 + $0x18] sm:$0xff]   ;;  %v7769_v33 = vld [vmem:[#allocation9 + $0x20] sm:$0xff]   ;;  %v7770_v34 = vld [vmem:[#allocation9 + $0xe8] sm:$0xff]  }
  0xab   : > { %v7771_v35 = vld [vmem:[#allocation9 + $0x28] sm:$0xff]   ;;  %v7772_v36 = vld [vmem:[#allocation9 + $0xf0] sm:$0xff]   ;;  %v7774_v38 = vld [vmem:[#allocation9 + $0xf8] sm:$0xff]   ;;  %p8016_p13 = pnand %p8015_p2, %p8009_p7 }
  0xac   : > { %v7773_v37 = vld [vmem:[#allocation9 + $0x30] sm:$0xff]   ;;  %v7775_v39 = vld [vmem:[#allocation9 + $0x38] sm:$0xff]   ;;  %v8405_v40 = vld [vmem:[#allocation9 + $0x100] sm:$0xff]  }
  0xad   : > { %6721 = vmatpush3.bf16.msra.mxu0 %v7739_v3  ;;  %6909 = vmatpush3.bf16.msra.mxu1 %v7762_v26  ;;  %v8408_v41 = vld [vmem:[#allocation9 + $0x40] sm:$0xff]  }
  0xae   : > { %6722 = vmatprep.subr.bf16.mxu0 %v7740_v5  ;;  %6910 = vmatprep.subr.bf16.mxu1 %v7764_v28  ;;  %v8414_v43 = vld [vmem:[%s9595_s2] ss:$0 sm:$0xff] }
  0xb1   : > { %6723 = vmatpush3.bf16.msra.mxu0 %v7740_v5  ;;  %6911 = vmatpush3.bf16.msra.mxu1 %v7764_v28 }
  0xb2   : > { %6724 = vmatprep.subr.bf16.mxu0 %v7741_v6  ;;  %6912 = vmatprep.subr.bf16.mxu1 %v7766_v30 }
  0xb5   : > { %6725 = vmatpush3.bf16.msra.mxu0 %v7741_v6  ;;  %6913 = vmatpush3.bf16.msra.mxu1 %v7766_v30 }
  0xb6   : > { %6726 = vmatprep.subr.bf16.mxu0 %v7742_v7  ;;  %6914 = vmatprep.subr.bf16.mxu1 %v7768_v32 }
  0xb9   : > { %6727 = vmatpush3.bf16.msra.mxu0 %v7742_v7  ;;  %6915 = vmatpush3.bf16.msra.mxu1 %v7768_v32 }
  0xba   : > { %6728 = vmatprep.subr.bf16.mxu0 %v7743_v8  ;;  %6916 = vmatprep.subr.bf16.mxu1 %v7770_v34 }
  0xbd   : > { %6729 = vmatpush3.bf16.msra.mxu0 %v7743_v8  ;;  %6917 = vmatpush3.bf16.msra.mxu1 %v7770_v34 }
  0xbe   : > { %6762 = vmatprep.subr.bf16.mxu0 %v7761_v25  ;;  %6918 = vmatprep.subr.bf16.mxu1 %v7772_v36 }
  0xc0   : > { %6731 = vmatmul.mubr.bf16.vlgmr.msra.gmra.mrb[0].mxu0 %v7745_v9 }
  0xc1   : > { %6734 = vmatprep.mubr.bf16.mxu0 %v7746_v10  ;;  %6763 = vmatpush3.bf16.msra.mxu0 %v7761_v25 }
  0xc2   : > { %6764 = vmatprep.subr.bf16.mxu0 %v7763_v27  ;;  %6919 = vmatpush3.bf16.msra.mxu1 %v7772_v36 }
  0xc3   : > { %6920 = vmatprep.subr.bf16.mxu1 %v7774_v38 }
  0xc5   : > { %6765 = vmatpush3.bf16.msra.mxu0 %v7763_v27 }
  0xc6   : > { %6766 = vmatprep.subr.bf16.mxu0 %v7765_v29  ;;  %6921 = vmatpush3.bf16.msra.mxu1 %v7774_v38 }
  0xc7   : > { %6954 = vmatprep.subr.bf16.mxu1 %v8405_v40 }
  0xc8   : > { %6735 = vmatmul.mubr.bf16.gmra.mrb[4].mxu0 %v7747_v11 }
  0xc9   : > { %6738 = vmatprep.mubr.bf16.mxu0 %v7748_v12  ;;  %6767 = vmatpush3.bf16.msra.mxu0 %v7765_v29 }
  0xca   : > { %6768 = vmatprep.subr.bf16.mxu0 %v7767_v31 }
  0xcd   : > { %6769 = vmatpush3.bf16.msra.mxu0 %v7767_v31 }
  0xce   : > { %6770 = vmatprep.subr.bf16.mxu0 %v7769_v33 }
  0xd0   : > { %6739 = vmatmul.mubr.bf16.gmra.mrb[8].mxu0 %v7749_v13 }
  0xd1   : > { %6742 = vmatprep.mubr.bf16.mxu0 %v7750_v14  ;;  %6771 = vmatpush3.bf16.msra.mxu0 %v7769_v33 }
  0xd2   : > { %6772 = vmatprep.subr.bf16.mxu0 %v7771_v35 }
  0xd5   : > { %6773 = vmatpush3.bf16.msra.mxu0 %v7771_v35 }
  0xd6   : > { %6774 = vmatprep.subr.bf16.mxu0 %v7773_v37 }
  0xd8   : > { %6743 = vmatmul.mubr.bf16.gmra.mrb[12].mxu0 %v7751_v15 }
  0xd9   : > { %6746 = vmatprep.mubr.bf16.mxu0 %v7752_v16  ;;  %6775 = vmatpush3.bf16.msra.mxu0 %v7773_v37 }
  0xda   : > { %6776 = vmatprep.subr.bf16.mxu0 %v7775_v39 }
  0xdd   : > { %6777 = vmatpush3.bf16.msra.mxu0 %v7775_v39 }
  0xde   : > { %6810 = vmatprep.subr.bf16.mxu0 %v8408_v41 }
  0xe0   : > { %6747 = vmatmul.mubr.bf16.gmra.mrb[16].mxu0 %v7753_v17 }
  0xe1   : > { %6750 = vmatprep.mubr.bf16.mxu0 %v7754_v18 }
  0xe8   : > { %6751 = vmatmul.mubr.bf16.gmra.mrb[20].mxu0 %v7755_v19 }
  0xe9   : > { %6754 = vmatprep.mubr.bf16.mxu0 %v7756_v20 }
  0xf0   : > { %6755 = vmatmul.mubr.bf16.gmra.mrb[24].mxu0 %v7757_v21 }
  0xf1   : > { %6758 = vmatprep.mubr.bf16.mxu0 %v7758_v22 }
  0xf8   : > { %6759 = vmatmul.mubr.bf16.gmra.mrb[28].mxu0 %v7759_v23 }
 0x193   : > { %v6732_v44 = vpop.f32.mrb[0].mxu0 }
 0x194   : > { %v652_v46 = vadd.f32 %v6732_v44, %v8414_v43  ;;  %v643_v47 = vpop.f32.mrb[1].mxu0 }
 0x195   : > { %v644_v48 = vadd.f32 %v8414_v43, %v643_v47  ;;  %v6733_v49 = vpop.f32.mrb[2].mxu0 }
 0x196   : > { %v772_v50 = vmax.f32 %v652_v46, 0.0  ;;  %v655_v51 = vadd.f32 %v6733_v49, %v8414_v43  ;;  %v646_v52 = vpop.f32.mrb[3].mxu0 }
 0x197   : > { %v770_v55 = vmax.f32 %v644_v48, 0.0  ;;  %v647_v56 = vadd.f32 %v8414_v43, %v646_v52 }
 0x198   : > { %v1355_v57 = vrot.slane %v772_v50, 7  ;;  %v773_v58 = vmax.f32 %v655_v51, 0.0  ;;  %v2159_v60 = vrot.slane %v772_v50, 1 }
 0x199   : > { %v8428_v61 = vrot.slane %v770_v55, 7  ;;  %v8430_v62 = vrot.slane %v770_v55, 1  ;;  %v771_v63 = vmax.f32 %v647_v56, 0.0 }
 0x19a   : > { %v1356_v0 = vrot.slane %v773_v58, 7  ;;  %v8432_v1 = vpack.c.bf16 %v773_v58, %v772_v50  ;;  %v2160_v2 = vrot.slane %v773_v58, 1  ;;  %v8437_v3 = vsel %vm1383_vm0, %v8421_v54, %v1355_v57 }
 0x19b   : > { %9691 = vst [vmem:[#allocation21_spill] sm:$0xff] %v8437_v3  ;;  %v1354_v4 = vrot.slane %v771_v63, 7  ;;  %v2158_v5 = vrot.slane %v771_v63, 1  ;;  %v6736_v6 = vpop.f32.mrb[4].mxu0  ;;  %v8443_v7 = vsel %vm1383_vm0, %v8421_v54, %v8428_v61  ;;  %v8445_v8 = vpack.c.bf16 %v771_v63, %v770_v55 }
 0x19c   : > { %v2214_v9 = vsel %vm2187_vm1, %v2159_v60, %v2160_v2  ;;  %v668_v10 = vadd.f32 %v6736_v6, %v8414_v43  ;;  %v659_v11 = vpop.f32.mrb[5].mxu0  ;;  %v8452_v12 = vsel %vm1383_vm0, %v1355_v57, %v1356_v0  ;;  %v8458_v13 = vsel %vm2187_vm1, %v8426_v59, %v8430_v62 }
 0x19d   : > { %9692 = vst [vmem:[#allocation22_spill] sm:$0xff] %v8452_v12  ;;  %9693 = vst [vmem:[#allocation23_spill] sm:$0xff] %v8458_v13  ;;  %v660_v14 = vadd.f32 %v8414_v43, %v659_v11  ;;  %v6737_v15 = vpop.f32.mrb[6].mxu0  ;;  %v8464_v16 = vsel %vm1383_vm0, %v8428_v61, %v1354_v4  ;;  %v1411_v17 = vsel %vm1383_vm0, %v1354_v4, %v1355_v57 }
 0x19e   : > { %v2215_v18 = vsel %vm2187_vm1, %v2158_v5, %v2159_v60  ;;  %v776_v19 = vmax.f32 %v668_v10, 0.0  ;;  %v671_v20 = vadd.f32 %v6737_v15, %v8414_v43  ;;  %v662_v21 = vpop.f32.mrb[7].mxu0  ;;  %v8474_v23 = vpack.c.bf16 %v8452_v12, %v1411_v17 }
 0x19f   : > { %v774_v24 = vmax.f32 %v660_v14, 0.0  ;;  %v663_v25 = vadd.f32 %v8414_v43, %v662_v21  ;;  %v2216_v26 = vsel %vm2187_vm1, %v8430_v62, %v2158_v5  ;;  %v8491_v39 = vsel %vm2187_vm1, %v8426_v59, %v2159_v60 }
 0x1a0   : > { %v1359_v28 = vrot.slane %v776_v19, 7  ;;  %v2163_v29 = vrot.slane %v776_v19, 1  ;;  %v777_v30 = vmax.f32 %v671_v20, 0.0  ;;  %v8482_v31 = vpack.c.bf16 %v2215_v18, %v2216_v26  ;;  %9695 = vst [vmem:[#allocation25_spill] sm:$0xff] %v8491_v39 }
 0x1a1   : > { %v1357_v32 = vrot.slane %v774_v24, 7  ;;  %v2161_v33 = vrot.slane %v774_v24, 1  ;;  %v775_v34 = vmax.f32 %v663_v25, 0.0 }
 0x1a2   : > { %9694 = vst [vmem:[#allocation24_spill] sm:$0xff] %v8482_v31  ;;  %v1360_v36 = vrot.slane %v777_v30, 7  ;;  %v2164_v37 = vrot.slane %v777_v30, 1  ;;  %v8486_v38 = vpack.c.bf16 %v777_v30, %v776_v19 }
 0x1a3   : > { %v2213_v42 = vsel %vm2187_vm1, %v2160_v2, %v2161_v33  ;;  %v1358_v44 = vrot.slane %v775_v34, 7  ;;  %v2162_v46 = vrot.slane %v775_v34, 1  ;;  %v6740_v47 = vpop.f32.mrb[8].mxu0  ;;  %v1409_v48 = vsel %vm1383_vm0, %v1356_v0, %v1357_v32 }
 0x1a4   : > { %v8497_v49 = vpack.c.bf16 %v2213_v42, %v2214_v9  ;;  %v684_v50 = vadd.f32 %v6740_v47, %v8414_v43  ;;  %v675_v51 = vpop.f32.mrb[9].mxu0  ;;  %v1406_v52 = vsel %vm1383_vm0, %v1359_v28, %v1360_v36  ;;  %v8502_v53 = vpack.c.bf16 %v775_v34, %v774_v24 }
 0x1a5   : > { %v676_v55 = vadd.f32 %v8414_v43, %v675_v51  ;;  %v6741_v56 = vpop.f32.mrb[10].mxu0  ;;  %v1408_v57 = vsel %vm1383_vm0, %v1357_v32, %v1358_v44  ;;  %v1407_v58 = vsel %vm1383_vm0, %v1358_v44, %v1359_v28  ;;  %v2211_v60 = vsel %vm2187_vm1, %v2162_v46, %v2163_v29 }
 0x1a6   : > { %9696 = vst [vmem:[#allocation26_spill] sm:$0xff] %v8497_v49  ;;  %v780_v63 = vmax.f32 %v684_v50, 0.0  ;;  %v687_v0 = vadd.f32 %v6741_v56, %v8414_v43  ;;  %v678_v2 = vpop.f32.mrb[11].mxu0  ;;  %v8512_v4 = vpack.c.bf16 %v1408_v57, %v1409_v48  ;;  %v8514_v5 = vpack.c.bf16 %v1406_v52, %v1407_v58 }
 0x1a7   : > { %v778_v6 = vmax.f32 %v676_v55, 0.0  ;;  %v679_v9 = vadd.f32 %v8414_v43, %v678_v2  ;;  %v2212_v10 = vsel %vm2187_vm1, %v2161_v33, %v2162_v46  ;;  %v2210_v11 = vsel %vm2187_vm1, %v2163_v29, %v2164_v37 }
 0x1a8   : > { %v1363_v14 = vrot.slane %v780_v63, 7  ;;  %v781_v15 = vmax.f32 %v687_v0, 0.0  ;;  %v8521_v17 = vpack.c.bf16 %v2211_v60, %v2212_v10  ;;  %v2167_v24 = vrot.slane %v780_v63, 1 }
 0x1a9   : > { %v1361_v18 = vrot.slane %v778_v6, 7  ;;  %v2165_v19 = vrot.slane %v778_v6, 1  ;;  %v779_v20 = vmax.f32 %v679_v9, 0.0 }
 0x1aa   : > { %9697 = vst [vmem:[#allocation27_spill] sm:$0xff] %v8521_v17  ;;  %v1364_v25 = vrot.slane %v781_v15, 7  ;;  %v2168_v26 = vrot.slane %v781_v15, 1  ;;  %v8525_v28 = vpack.c.bf16 %v781_v15, %v780_v63 }
 0x1ab   : > { %v1362_v30 = vrot.slane %v779_v20, 7  ;;  %v2166_v32 = vrot.slane %v779_v20, 1  ;;  %v6744_v33 = vpop.f32.mrb[12].mxu0  ;;  %v1405_v29 = vsel %vm1383_vm0, %v1360_v36, %v1361_v18  ;;  %v8529_v34 = vpack.c.bf16 %v779_v20, %v778_v6 }
 0x1ac   : > { %v700_v42 = vadd.f32 %v6744_v33, %v8414_v43  ;;  %v691_v44 = vpop.f32.mrb[13].mxu0  ;;  %v1402_v46 = vsel %vm1383_vm0, %v1363_v14, %v1364_v25  ;;  %v2209_v47 = vsel %vm2187_vm1, %v2164_v37, %v2165_v19  ;;  %v2206_v48 = vsel %vm2187_vm1, %v2167_v24, %v2168_v26 }
 0x1ad   : > { %v692_v50 = vadd.f32 %v8414_v43, %v691_v44  ;;  %v6745_v51 = vpop.f32.mrb[14].mxu0  ;;  %v1404_v36 = vsel %vm1383_vm0, %v1361_v18, %v1362_v30  ;;  %v1403_v52 = vsel %vm1383_vm0, %v1362_v30, %v1363_v14  ;;  %v8543_v55 = vpack.c.bf16 %v2209_v47, %v2210_v11 }
 0x1ae   : > { %v784_v56 = vmax.f32 %v700_v42, 0.0  ;;  %v703_v57 = vadd.f32 %v6745_v51, %v8414_v43  ;;  %v694_v58 = vpop.f32.mrb[15].mxu0  ;;  %v8546_v60 = vpack.c.bf16 %v1404_v36, %v1405_v29  ;;  %v8548_v37 = vpack.c.bf16 %v1402_v46, %v1403_v52 }
 0x1af   : > { %9698 = vst [vmem:[#allocation28_spill] sm:$0xff] %v8543_v55  ;;  %v782_v63 = vmax.f32 %v692_v50, 0.0  ;;  %v695_v0 = vadd.f32 %v8414_v43, %v694_v58  ;;  %v2207_v2 = vsel %vm2187_vm1, %v2166_v32, %v2167_v24  ;;  %v2208_v6 = vsel %vm2187_vm1, %v2165_v19, %v2166_v32 }
 0x1b0   : > { %v785_v9 = vmax.f32 %v703_v57, 0.0  ;;  %v8555_v10 = vpack.c.bf16 %v2207_v2, %v2208_v6  ;;  %v1367_v11 = vrot.slane %v784_v56, 7  ;;  %v2171_v20 = vrot.slane %v784_v56, 1 }
 0x1b1   : > { %v1365_v14 = vrot.slane %v782_v63, 7  ;;  %v2169_v15 = vrot.slane %v782_v63, 1  ;;  %v783_v18 = vmax.f32 %v695_v0, 0.0 }
 0x1b2   : > { %9699 = vst [vmem:[#allocation29_spill] sm:$0xff] %v8555_v10  ;;  %v1368_v30 = vrot.slane %v785_v9, 7  ;;  %v2172_v33 = vrot.slane %v785_v9, 1  ;;  %v8557_v29 = vpack.c.bf16 %v785_v9, %v784_v56 }
 0x1b3   : > { %v1366_v42 = vrot.slane %v783_v18, 7  ;;  %v2170_v44 = vrot.slane %v783_v18, 1  ;;  %v6748_v46 = vpop.f32.mrb[16].mxu0  ;;  %v1401_v24 = vsel %vm1383_vm0, %v1364_v25, %v1365_v14  ;;  %v8561_v47 = vpack.c.bf16 %v783_v18, %v782_v63 }
 0x1b4   : > { %v716_v19 = vadd.f32 %v6748_v46, %v8414_v43  ;;  %v707_v32 = vpop.f32.mrb[17].mxu0  ;;  %v1398_v50 = vsel %vm1383_vm0, %v1367_v11, %v1368_v30  ;;  %v2205_v51 = vsel %vm2187_vm1, %v2168_v26, %v2169_v15  ;;  %v2202_v36 = vsel %vm2187_vm1, %v2171_v20, %v2172_v33 }
 0x1b5   : > { %v708_v52 = vadd.f32 %v8414_v43, %v707_v32  ;;  %v6749_v56 = vpop.f32.mrb[18].mxu0  ;;  %v1400_v25 = vsel %vm1383_vm0, %v1365_v14, %v1366_v42  ;;  %v1399_v57 = vsel %vm1383_vm0, %v1366_v42, %v1367_v11  ;;  %v8575_v58 = vpack.c.bf16 %v2205_v51, %v2206_v48 }
 0x1b6   : > { %v788_v63 = vmax.f32 %v716_v19, 0.0  ;;  %v719_v0 = vadd.f32 %v6749_v56, %v8414_v43  ;;  %v710_v2 = vpop.f32.mrb[19].mxu0  ;;  %v8578_v6 = vpack.c.bf16 %v1400_v25, %v1401_v24  ;;  %v8580_v26 = vpack.c.bf16 %v1398_v50, %v1399_v57 }
 0x1b7   : > { %9700 = vst [vmem:[#allocation30_spill] sm:$0xff] %v8575_v58  ;;  %v786_v9 = vmax.f32 %v708_v52, 0.0  ;;  %v711_v18 = vadd.f32 %v8414_v43, %v710_v2  ;;  %v2203_v46 = vsel %vm2187_vm1, %v2170_v44, %v2171_v20  ;;  %v2204_v14 = vsel %vm2187_vm1, %v2169_v15, %v2170_v44 }
 0x1b8   : > { %v789_v11 = vmax.f32 %v719_v0, 0.0  ;;  %v8588_v48 = vadd.s32 16, %v8416_v45  ;;  %v8590_v42 = vpack.c.bf16 %v2203_v46, %v2204_v14  ;;  %v1371_v19 = vrot.slane %v788_v63, 7 }
 0x1b9   : > { %v1369_v24 = vrot.slane %v786_v9, 7  ;;  %v2173_v32 = vrot.slane %v786_v9, 1  ;;  %v787_v50 = vmax.f32 %v711_v18, 0.0  ;;  %v2175_v51 = vrot.slane %v788_v63, 1 }
 0x1ba   : > { %9701 = vst [vmem:[#allocation31_spill] sm:$0xff] %v8590_v42  ;;  %v1372_v52 = vrot.slane %v789_v11, 7  ;;  %v2176_v56 = vrot.slane %v789_v11, 1  ;;  %v8592_v25 = vpack.c.bf16 %v789_v11, %v788_v63 }
 0x1bb   : > { %v1370_v57 = vrot.slane %v787_v50, 7  ;;  %v2174_v20 = vrot.slane %v787_v50, 1  ;;  %v6752_v2 = vpop.f32.mrb[20].mxu0  ;;  %v1397_v15 = vsel %vm1383_vm0, %v1368_v30, %v1369_v24  ;;  %v8596_v44 = vpack.c.bf16 %v787_v50, %v786_v9 }
 0x1bc   : > { %v732_v0 = vadd.f32 %v6752_v2, %v8414_v43  ;;  %v723_v46 = vpop.f32.mrb[21].mxu0  ;;  %v1394_v14 = vsel %vm1383_vm0, %v1371_v19, %v1372_v52  ;;  %v2201_v18 = vsel %vm2187_vm1, %v2172_v33, %v2173_v32  ;;  %v2198_v63 = vsel %vm2187_vm1, %v2175_v51, %v2176_v56 }
 0x1bd   : > { %v724_v11 = vadd.f32 %v8414_v43, %v723_v46  ;;  %v6753_v21 = vpop.f32.mrb[22].mxu0  ;;  %v1396_v30 = vsel %vm1383_vm0, %v1369_v24, %v1370_v57  ;;  %v1395_v9 = vsel %vm1383_vm0, %v1370_v57, %v1371_v19  ;;  %v8610_v50 = vpack.c.bf16 %v2201_v18, %v2202_v36 }
 0x1be   : > { %v792_v2 = vmax.f32 %v732_v0, 0.0  ;;  %v735_v35 = vadd.f32 %v6753_v21, %v8414_v43  ;;  %v726_v27 = vpop.f32.mrb[23].mxu0  ;;  %v8613_v22 = vpack.c.bf16 %v1396_v30, %v1397_v15  ;;  %v8615_v33 = vpack.c.bf16 %v1394_v14, %v1395_v9 }
 0x1bf   : > { %9702 = vst [vmem:[#allocation32_spill] sm:$0xff] %v8610_v50  ;;  %v790_v39 = vmax.f32 %v724_v11, 0.0  ;;  %v727_v46 = vadd.f32 %v8414_v43, %v726_v27  ;;  %v2199_v3 = vsel %vm2187_vm1, %v2174_v20, %v2175_v51  ;;  %v2200_v24 = vsel %vm2187_vm1, %v2173_v32, %v2174_v20 }
 0x1c0   : > { %v793_v19 = vmax.f32 %v735_v35, 0.0  ;;  %v875_v36 = vand.u32 15, %v8416_v45  ;;  %v8624_v57 = vadd.s32 32, %v8416_v45  ;;  %v8626_v21 = vpack.c.bf16 %v2199_v3, %v2200_v24 }
 0x1c1   : > { %v1375_v15 = vrot.slane %v792_v2, 7  ;;  %v1373_v0 = vrot.slane %v790_v39, 7  ;;  %v2177_v14 = vrot.slane %v790_v39, 1  ;;  %v791_v18 = vmax.f32 %v727_v46, 0.0 }
 0x1c2   : > { %9703 = vst [vmem:[#allocation33_spill] sm:$0xff] %v8626_v21  ;;  %v2179_v11 = vrot.slane %v792_v2, 1  ;;  %v1376_v27 = vrot.slane %v793_v19, 7  ;;  %v2180_v30 = vrot.slane %v793_v19, 1  ;;  %v8628_v9 = vpack.c.bf16 %v793_v19, %v792_v2 }
 0x1c3   : > { %v1374_v51 = vrot.slane %v791_v18, 7  ;;  %v2178_v12 = vrot.slane %v791_v18, 1  ;;  %v6756_v32 = vpop.f32.mrb[24].mxu0  ;;  %v1393_v35 = vsel %vm1383_vm0, %v1372_v52, %v1373_v0  ;;  %v8632_v20 = vpack.c.bf16 %v791_v18, %v790_v39 }
 0x1c4   : > { %v748_v3 = vadd.f32 %v6756_v32, %v8414_v43  ;;  %v739_v24 = vpop.f32.mrb[25].mxu0  ;;  %v1390_v21 = vsel %vm1383_vm0, %v1375_v15, %v1376_v27  ;;  %v2197_v46 = vsel %vm2187_vm1, %v2176_v56, %v2177_v14  ;;  %v2194_v2 = vsel %vm2187_vm1, %v2179_v11, %v2180_v30 }
 0x1c5   : > { %v740_v19 = vadd.f32 %v8414_v43, %v739_v24  ;;  %v6757_v50 = vpop.f32.mrb[26].mxu0  ;;  %v1392_v52 = vsel %vm1383_vm0, %v1373_v0, %v1374_v51  ;;  %v1391_v39 = vsel %vm1383_vm0, %v1374_v51, %v1375_v15  ;;  %v8646_v18 = vpack.c.bf16 %v2197_v46, %v2198_v63 }
 0x1c6   : > { %v8648_v32 = vmax.f32 %v748_v3, 0.0  ;;  %v751_v42 = vadd.f32 %v6757_v50, %v8414_v43  ;;  %v742_v58 = vpop.f32.mrb[27].mxu0  ;;  %v8651_v56 = vpack.c.bf16 %v1392_v52, %v1393_v35  ;;  %v8653_v10 = vpack.c.bf16 %v1390_v21, %v1391_v39 }
 0x1c7   : > { %9704 = vst [vmem:[#allocation34_spill] sm:$0xff] %v8646_v18  ;;  %v794_v55 = vmax.f32 %v740_v19, 0.0  ;;  %v743_v24 = vadd.f32 %v8414_v43, %v742_v58  ;;  %v2195_v0 = vsel %vm2187_vm1, %v2178_v12, %v2179_v11  ;;  %v2196_v15 = vsel %vm2187_vm1, %v2177_v14, %v2178_v12 }
 0x1c8   : > { %v8660_v63 = vmax.f32 %v751_v42, 0.0  ;;  %v889_v51 = vand.u32 15, %v8588_v48  ;;  %v8663_v3 = vpack.c.bf16 %v2195_v0, %v2196_v15  ;;  %vm8665_vm2 = vcmp.ne.s32.totalorder %v875_v36, 0 }
 0x1c9   : > { %v1377_v50 = vrot.slane %v794_v55, 7  ;;  %v2181_v35 = vrot.slane %v794_v55, 1  ;;  %v795_v46 = vmax.f32 %v743_v24, 0.0  ;;  %v903_v58 = vand.u32 15, %v8624_v57  ;;  %vm8726_vm6 = vmpackc.low %vm9633_vm5, %vm8665_vm2 }
 0x1ca   : > { %9705 = vst [vmem:[#allocation35_spill] sm:$0xff] %v8663_v3  ;;  %v1379_v11 = vrot.slane %v8648_v32, 7  ;;  %v1380_v19 = vrot.slane %v8660_v63, 7  ;;  %v8673_v12 = vadd.s32 48, %v8416_v45  ;;  %v8677_v48 = vpack.c.bf16 %v8660_v63, %v8648_v32 }
 0x1cb   : > { %v1378_v42 = vrot.slane %v795_v46, 7  ;;  %v2182_v14 = vrot.slane %v795_v46, 1  ;;  %v6760_v52 = vpop.f32.mrb[28].mxu0  ;;  %v1389_v36 = vsel %vm1383_vm0, %v1376_v27, %v1377_v50  ;;  %v8681_v39 = vpack.c.bf16 %v795_v46, %v794_v55 }
 0x1cc   : > { %9708 = vst [vmem:[#allocation36_spill] sm:$0xff] %v8677_v48  ;;  %v2183_v57 = vrot.slane %v8648_v32, 1  ;;  %v764_v24 = vadd.f32 %v6760_v52, %v8414_v43  ;;  %v755_v0 = vpop.f32.mrb[29].mxu0  ;;  %v1386_v15 = vsel %vm1383_vm0, %v1379_v11, %v1380_v19  ;;  %v2193_v3 = vsel %vm2187_vm1, %v2180_v30, %v2181_v35  ;;  %v9836_v48 = vld [vmem:[#allocation28_spill] sm:$0xff] }
 0x1cd   : > { %9709 = vst [vmem:[#allocation37_spill] sm:$0xff] %v8681_v39  ;;  %v756_v18 = vadd.f32 %v8414_v43, %v755_v0  ;;  %v6761_v17 = vpop.f32.mrb[30].mxu0  ;;  %v1388_v49 = vsel %vm1383_vm0, %v1377_v50, %v1378_v42  ;;  %v1387_v55 = vsel %vm1383_vm0, %v1378_v42, %v1379_v11  ;;  %v8694_v27 = vpack.c.bf16 %v2193_v3, %v2194_v2  ;;  %v7782_v3 = vld [vmem:[#allocation9 + $0x48] sm:$0xff]  }
 0x1ce   : > { %v800_v32 = vmax.f32 %v764_v24, 0.0  ;;  %v767_v46 = vadd.f32 %v6761_v17, %v8414_v43  ;;  %v758_v52 = vpop.f32.mrb[31].mxu0  ;;  %v8697_v13 = vpack.c.bf16 %v1388_v49, %v1389_v36  ;;  %v8699_v31 = vpack.c.bf16 %v1386_v15, %v1387_v55 }
 0x1cf   : > { %9710 = vst [vmem:[#allocation38_spill] sm:$0xff] %v8694_v27  ;;  %v798_v30 = vmax.f32 %v756_v18, 0.0  ;;  %v759_v0 = vadd.f32 %v8414_v43, %v758_v52  ;;  %vm8702_vm3 = vcmp.ne.s32.totalorder %v889_v51, 0  ;;  %v2191_v50 = vsel %vm2187_vm1, %v2182_v14, %v2183_v57 }
 0x1d0   : > { %v801_v2 = vmax.f32 %v767_v46, 0.0  ;;  %vm8708_vm4 = vcmp.ne.s32.totalorder %v903_v58, 0  ;;  %v847_v49 = vadd.s32 64, %v8416_v45  ;;  %v2192_v17 = vsel %vm2187_vm1, %v2181_v35, %v2182_v14  ;;  %vm8744_vm7 = vmpackc.low %vm9633_vm5, %vm8702_vm3 }
 0x1d1   : > { %v2184_v18 = vrot.slane %v8660_v63, 1  ;;  %v1381_v43 = vrot.slane %v798_v30, 7  ;;  %v799_v51 = vmax.f32 %v759_v0, 0.0  ;;  %v917_v11 = vand.u32 15, %v8673_v12  ;;  %vm8762_vm8 = vmpackc.low %vm9633_vm5, %vm8708_vm4  ;;  %v7821_v63 = vld [vmem:[#allocation9 + $0x1e8] sm:$0xff]  }
 0x1d2   : > { %v2652_v42 = vrot.slane %v800_v32, 7  ;;  %v2185_v36 = vrot.slane %v798_v30, 1  ;;  %v2653_v24 = vrot.slane %v801_v2, 7  ;;  %v8717_v15 = vpack.c.bf16 %v801_v2, %v800_v32 }
 0x1d3   : > { %v1382_v58 = vrot.slane %v799_v51, 7  ;;  %v2186_v55 = vrot.slane %v799_v51, 1  ;;  %v1385_v46 = vsel %vm1383_vm0, %v1380_v19, %v1381_v43  ;;  %v8721_v52 = vpack.c.bf16 %v799_v51, %v798_v30 }
 0x1d4   : > { %9715 = vst [vmem:[#allocation39_spill] sm:$0xff] %v8717_v15  ;;  %v3425_v27 = vrot.slane %v801_v2, 1  ;;  %v2685_v35 = vsel %vm1383_vm0, %v2653_v24, %v8428_v61  ;;  %v2654_v12 = vsel %vm1383_vm0, %v2652_v42, %v2653_v24  ;;  %v8735_v14 = vpack.c.bf16 %v2191_v50, %v2192_v17 }
 0x1d5   : > { %9716 = vst [vmem:[#allocation40_spill] sm:$0xff] %v8721_v52  ;;  %v6074_v19 = vpack.c.bf16 %v8464_v16, %v2685_v35  ;;  %v1415_v21 = vsel %vm1383_vm0, %v1382_v58, %v8421_v54  ;;  %v1384_v61 = vsel %vm1383_vm0, %v1381_v43, %v1382_v58  ;;  %v2655_v0 = vsel %vm1383_vm0, %v1382_v58, %v2652_v42  ;;  %v7777_v43 = vld [vmem:[#allocation9 + $0x108] sm:$0xff]  }
 0x1d6   : > { %v3424_v50 = vrot.slane %v800_v32, 1  ;;  %v5922_v2 = vpack.c.bf16 %v8421_v54, %v1415_v21  ;;  %v8753_v17 = vpack.c.bf16 %v1384_v61, %v1385_v46  ;;  %v8755_v51 = vpack.c.bf16 %v2654_v12, %v2655_v0  ;;  %v7784_v61 = vld [vmem:[#allocation9 + $0x50] sm:$0xff]  }
 0x1d7   : > { %6922 = vmatprep.mubr.msk.bf16.mxu1 %vm8726_vm6, %v6074_v19  ;;  %v931_v35 = vand.u32 15, %v847_v49  ;;  %v2189_v32 = vsel %vm2187_vm1, %v2184_v18, %v2185_v36  ;;  %v2190_v42 = vsel %vm2187_vm1, %v2183_v57, %v2184_v18  ;;  %v8772_v58 = vsel %vm2187_vm1, %v2185_v36, %v2186_v55 }
 0x1d8   : > { %6778 = vmatprep.mubr.msk.bf16.mxu0 %vm8726_vm6, %v5922_v2  ;;  %6923 = vmatmul.mubr.msk.bf16.vlgmr.msra.gmra.mrb[0].mxu1 %vm8744_vm7, %v8474_v23  ;;  %v8779_v46 = vpack.c.bf16 %v2189_v32, %v2190_v42  ;;  %v3427_v49 = vsel %vm2187_vm1, %v2186_v55, %v3424_v50  ;;  %v8785_v57 = vsel %vm2187_vm1, %v3424_v50, %v3425_v27  ;;  %vm8793_vm9 = vcmp.ne.s32.totalorder %v917_v11, 0  ;;  %v7779_v2 = vld [vmem:[#allocation9 + $0x118] sm:$0xff]   ;;  %v7780_v42 = vld [vmem:[#allocation9 + $0x120] sm:$0xff]   ;;  %v7794_v11 = vld [vmem:[#allocation9 + $0x150] sm:$0xff]  }
 0x1d9   : > { %6955 = vmatpush3.bf16.msra.mxu1 %v8405_v40  ;;  %v9723_v18 = vpack.c.bf16 %v8464_v16, %v8443_v7  ;;  %v8798_v12 = vpack.c.bf16 %v3427_v49, %v8772_v58  ;;  %v8803_v19 = vsel %vm2187_vm1, %v3425_v27, %v8430_v62  ;;  %v8808_v40 = vsel %vm2187_vm1, %v2186_v55, %v8426_v59  ;;  %v7778_v7 = vld [vmem:[#allocation9 + $0x110] sm:$0xff]   ;;  %vm8838_vm11 = vmpackc.low %vm9633_vm5, %vm8793_vm9  ;;  %v9845_v49 = vld [vmem:[#allocation31_spill] sm:$0xff] }
 0x1da   : > { %6926 = vmatprep.mubr.msk.bf16.mxu1 %vm8762_vm8, %v8512_v4  ;;  %v849_v16 = vadd.s32 80, %v8416_v45  ;;  %v8824_v55 = vsel %vm1383_vm0, %v2653_v24, %v8421_v54  ;;  %6956 = vmatprep.subr.bf16.mxu1 %v7777_v43  ;;  %vm6398_vm10 = vcmp.ne.s32.totalorder %v931_v35, 0  ;;  %v851_v21 = vadd.s32 96, %v8416_v45  ;;  %v7785_v35 = vld [vmem:[#allocation9 + $0x58] sm:$0xff]   ;;  %v7800_v62 = vld [vmem:[#allocation9 + $0x90] sm:$0xff]  }
 0x1db   : > { %6779 = vmatmul.mubr.msk.bf16.vlgmr.msra.gmra.mrb[32].mxu0 %vm8744_vm7, %v9723_v18  ;;  %vm8843_vm12 = vmpackc.low %vm9633_vm5, %vm6398_vm10  ;;  %v855_v32 = vadd.s32 128, %v8416_v45  ;;  %v9741_v0 = vmov 0  ;;  %v9829_v30 = vld [vmem:[#allocation39_spill] sm:$0xff]  ;;  %v9842_v24 = vld [vmem:[#allocation30_spill] sm:$0xff] }
 0x1dc   : > { %6782 = vmatprep.mubr.msk.bf16.mxu0 %vm8762_vm8, %v8474_v23  ;;  %6811 = vmatpush3.bf16.msra.mxu0 %v8408_v41  ;;  %v8831_v23 = vsel %vm2187_vm1, %v3425_v27, %v8426_v59  ;;  %v945_v27 = vand.u32 15, %v849_v16  ;;  %v959_v50 = vand.u32 15, %v851_v21  ;;  %v7783_v16 = vld [vmem:[#allocation9 + $0x128] sm:$0xff]  }
 0x1dd   : > { %9726 = vst [vmem:[#allocation41_spill] sm:$0xff] %v8831_v23  ;;  %6812 = vmatprep.subr.bf16.mxu0 %v7782_v3  ;;  %6957 = vmatpush3.bf16.msra.mxu1 %v7777_v43  ;;  %v853_v43 = vadd.s32 112, %v8416_v45  ;;  %v7788_v21 = vld [vmem:[#allocation9 + $0x68] sm:$0xff]   ;;  %v7795_v23 = vld [vmem:[#allocation9 + $0x158] sm:$0xff]  }
 0x1de   : > { %6958 = vmatprep.subr.bf16.mxu1 %v7778_v7  ;;  %vm6399_vm13 = vcmp.ne.s32.totalorder %v945_v27, 0  ;;  %vm6400_vm14 = vcmp.ne.s32.totalorder %v959_v50, 0  ;;  %v859_v27 = vadd.s32 160, %v8416_v45  ;;  %v7786_v50 = vld [vmem:[#allocation9 + $0x130] sm:$0xff]  }
 0x1df   : > { %vm8862_vm15 = vmpackc.low %vm9633_vm5, %vm6399_vm13  ;;  %v973_v36 = vand.u32 15, %v853_v43 }
 0x1e0   : > { %6813 = vmatpush3.bf16.msra.mxu0 %v7782_v3  ;;  %6927 = vmatmul.mubr.msk.bf16.gmra.mrb[4].mxu1 %vm8838_vm11, %v8514_v5  ;;  %v7787_v3 = vld [vmem:[#allocation9 + $0x60] sm:$0xff]   ;;  %vm8867_vm0 = vmpackc.low %vm9633_vm5, %vm6400_vm14 }
 0x1e1   : > { %6814 = vmatprep.subr.bf16.mxu0 %v7784_v61  ;;  %6930 = vmatprep.mubr.msk.bf16.mxu1 %vm8843_vm12, %v8546_v60  ;;  %vm6401_vm1 = vcmp.ne.s32.totalorder %v973_v36, 0  ;;  %v7789_v36 = vld [vmem:[#allocation9 + $0x138] sm:$0xff]  }
 0x1e2   : > { %6959 = vmatpush3.bf16.msra.mxu1 %v7778_v7  ;;  %v987_v7 = vand.u32 15, %v855_v32  ;;  %vm8886_vm3 = vmpackc.low %vm9633_vm5, %vm6401_vm1 }
 0x1e3   : > { %6783 = vmatmul.mubr.msk.bf16.gmra.mrb[36].mxu0 %vm8838_vm11, %v8512_v4  ;;  %6960 = vmatprep.subr.bf16.mxu1 %v7779_v2 }
 0x1e4   : > { %6786 = vmatprep.mubr.msk.bf16.mxu0 %vm8843_vm12, %v8514_v5  ;;  %6815 = vmatpush3.bf16.msra.mxu0 %v7784_v61  ;;  %v857_v61 = vadd.s32 144, %v8416_v45  ;;  %vm6402_vm2 = vcmp.ne.s32.totalorder %v987_v7, 0  ;;  %v861_v7 = vadd.s32 176, %v8416_v45 }
 0x1e5   : > { %6816 = vmatprep.subr.bf16.mxu0 %v7785_v35  ;;  %vm8891_vm4 = vmpackc.low %vm9633_vm5, %vm6402_vm2 }
 0x1e6   : > { %6961 = vmatpush3.bf16.msra.mxu1 %v7779_v2  ;;  %v7790_v2 = vld [vmem:[#allocation9 + $0x70] sm:$0xff]   ;;  %v1001_v32 = vand.u32 15, %v857_v61  ;;  %v7797_v61 = vld [vmem:[#allocation9 + $0x80] sm:$0xff]  }
 0x1e7   : > { %6962 = vmatprep.subr.bf16.mxu1 %v7780_v42 }
 0x1e8   : > { %6817 = vmatpush3.bf16.msra.mxu0 %v7785_v35  ;;  %6931 = vmatmul.mubr.msk.bf16.gmra.mrb[8].mxu1 %vm8862_vm15, %v8548_v37  ;;  %vm6403_vm9 = vcmp.ne.s32.totalorder %v1001_v32, 0  ;;  %v1029_v32 = vand.u32 15, %v861_v7  ;;  %v9848_v35 = vld [vmem:[#allocation32_spill] sm:$0xff] }
 0x1e9   : > { %6818 = vmatprep.subr.bf16.mxu0 %v7787_v3  ;;  %6934 = vmatprep.mubr.msk.bf16.mxu1 %vm8867_vm0, %v8578_v6  ;;  %vm8910_vm13 = vmpackc.low %vm9633_vm5, %vm6403_vm9 }
 0x1ea   : > { %6963 = vmatpush3.bf16.msra.mxu1 %v7780_v42  ;;  %v1015_v42 = vand.u32 15, %v859_v27  ;;  %v9739_v27 = vmov 0  ;;  %vm6405_vm1 = vcmp.ne.s32.totalorder %v1029_v32, 0  ;;  %v869_v32 = vadd.s32 240, %v8416_v45 }
 0x1eb   : > { %6787 = vmatmul.mubr.msk.bf16.gmra.mrb[40].mxu0 %vm8862_vm15, %v8546_v60  ;;  %6964 = vmatprep.subr.bf16.mxu1 %v7783_v16  ;;  %v9740_v27 = vsel %vm8910_vm13, 4294967295, %v9739_v27  ;;  %vm8934_vm9 = vmpackc.low %vm9633_vm5, %vm6405_vm1 }
 0x1ec   : > { %6790 = vmatprep.mubr.msk.bf16.mxu0 %vm8867_vm0, %v8548_v37  ;;  %6819 = vmatpush3.bf16.msra.mxu0 %v7787_v3  ;;  %v7791_v3 = vld [vmem:[#allocation9 + $0x78] sm:$0xff]   ;;  %vm6404_vm10 = vcmp.ne.s32.totalorder %v1015_v42, 0  ;;  %v867_v42 = vadd.s32 224, %v8416_v45 }
 0x1ed   : > { %6820 = vmatprep.subr.bf16.mxu0 %v7788_v21  ;;  %vm8915_vm14 = vmpackc.low %vm9633_vm5, %vm6404_vm10 }
 0x1ee   : > { %6965 = vmatpush3.bf16.msra.mxu1 %v7783_v16  ;;  %v863_v16 = vadd.s32 192, %v8416_v45  ;;  %v9742_v0 = vsel %vm8915_vm14, 4294967295, %v9741_v0 }
 0x1ef   : > { %6966 = vmatprep.subr.bf16.mxu1 %v7786_v50 }
 0x1f0   : > { %6821 = vmatpush3.bf16.msra.mxu0 %v7788_v21  ;;  %6935 = vmatmul.mubr.msk.bf16.gmra.mrb[12].mxu1 %vm8886_vm3, %v8580_v26  ;;  %v7792_v21 = vld [vmem:[#allocation9 + $0x140] sm:$0xff]  }
 0x1f1   : > { %6822 = vmatprep.subr.bf16.mxu0 %v7790_v2  ;;  %6938 = vmatprep.mubr.msk.bf16.mxu1 %vm8891_vm4, %v8613_v22 }
 0x1f2   : > { %6967 = vmatpush3.bf16.msra.mxu1 %v7786_v50  ;;  %v1043_v50 = vand.u32 15, %v863_v16  ;;  %v1071_v16 = vand.u32 15, %v867_v42  ;;  %v1085_v42 = vand.u32 15, %v869_v32  ;;  %v7793_v32 = vld [vmem:[#allocation9 + $0x148] sm:$0xff]  }
 0x1f3   : > { %6791 = vmatmul.mubr.msk.bf16.gmra.mrb[44].mxu0 %vm8886_vm3, %v8578_v6  ;;  %6968 = vmatprep.subr.bf16.mxu1 %v7789_v36 }
 0x1f4   : > { %6794 = vmatprep.mubr.msk.bf16.mxu0 %vm8891_vm4, %v8580_v26  ;;  %6823 = vmatpush3.bf16.msra.mxu0 %v7790_v2  ;;  %v865_v2 = vadd.s32 208, %v8416_v45  ;;  %vm6406_vm2 = vcmp.ne.s32.totalorder %v1043_v50, 0  ;;  %v9747_v50 = vmov 0 }
 0x1f5   : > { %6824 = vmatprep.subr.bf16.mxu0 %v7791_v3  ;;  %vm8939_vm10 = vmpackc.low %vm9633_vm5, %vm6406_vm2  ;;  %vm6408_vm2 = vcmp.ne.s32.totalorder %v1071_v16, 0  ;;  %v9629_v16 = vmov 0.0|0.0  }
 0x1f6   : > { %6969 = vmatpush3.bf16.msra.mxu1 %v7789_v36  ;;  %v9743_v36 = vmov 0  ;;  %v1057_v7 = vand.u32 15, %v865_v2  ;;  %v9749_v2 = vmov 0 }
 0x1f7   : > { %7002 = vmatprep.subr.bf16.mxu1 %v7792_v21  ;;  %v9744_v36 = vsel %vm8934_vm9, 4294967295, %v9743_v36 }
 0x1f8   : > { %6825 = vmatpush3.bf16.msra.mxu0 %v7791_v3  ;;  %6939 = vmatmul.mubr.msk.bf16.gmra.mrb[16].mxu1 %vm8910_vm13, %v8615_v33  ;;  %v9745_v3 = vmov 0  ;;  %vm6407_vm1 = vcmp.ne.s32.totalorder %v1057_v7, 0  ;;  %v9751_v7 = vmov 0 }
 0x1f9   : > { %6858 = vmatprep.subr.bf16.mxu0 %v7797_v61  ;;  %6942 = vmatprep.mubr.msk.bf16.mxu1 %vm8915_vm14, %v8651_v56  ;;  %v9746_v3 = vsel %vm8939_vm10, 4294967295, %v9745_v3 }
 0x1fb   : > { %6795 = vmatmul.mubr.msk.bf16.gmra.mrb[48].mxu0 %vm8910_vm13, %v8613_v22  ;;  %vm8962_vm13 = vmpackc.low %vm9633_vm5, %vm6408_vm2 }
 0x1fc   : > { %6798 = vmatprep.mubr.msk.bf16.mxu0 %vm8915_vm14, %v8615_v33  ;;  %vm8957_vm14 = vmpackc.low %vm9633_vm5, %vm6407_vm1  ;;  %v9750_v2 = vsel %vm8962_vm13, 4294967295, %v9749_v2  ;;  %vm6409_vm1 = vcmp.ne.s32.totalorder %v1085_v42, 0  ;;  %v7798_v42 = vld [vmem:[#allocation9 + $0x88] sm:$0xff]  }
 0x1fd   : > { %v9748_v50 = vsel %vm8957_vm14, 4294967295, %v9747_v50  ;;  %vm8979_vm2 = vmpackc.low %vm9633_vm5, %vm6409_vm1 }
 0x1fe   : > { %v9752_v7 = vsel %vm8979_vm2, 4294967295, %v9751_v7 }
 0x200   : > { %6943 = vmatmul.mubr.msk.bf16.gmra.mrb[20].mxu1 %vm8934_vm9, %v8653_v10 }
 0x201   : > { %6946 = vmatprep.mubr.msk.bf16.mxu1 %vm8939_vm10, %v8697_v13 }
 0x203   : > { %6799 = vmatmul.mubr.msk.bf16.gmra.mrb[52].mxu0 %vm8934_vm9, %v8651_v56 }
 0x204   : > { %6802 = vmatprep.mubr.msk.bf16.mxu0 %vm8939_vm10, %v8653_v10 }
 0x208   : > { %6947 = vmatmul.mubr.msk.bf16.gmra.mrb[24].mxu1 %vm8957_vm14, %v8699_v31 }
 0x209   : > { %6950 = vmatprep.mubr.msk.bf16.mxu1 %vm8962_vm13, %v8753_v17 }
 0x20b   : > { %6803 = vmatmul.mubr.msk.bf16.gmra.mrb[56].mxu0 %vm8957_vm14, %v8697_v13 }
 0x20c   : > { %6806 = vmatprep.mubr.msk.bf16.mxu0 %vm8962_vm13, %v8699_v31  ;;  %vm9760_vm13 = vmmov 1  }
 0x210   : > { %6951 = vmatmul.mubr.msk.bf16.gmra.mrb[28].mxu1 %vm8979_vm2, %v8755_v51 }
 0x211   : > { %6970 = vmatprep.mubr.bf16.mxu1 %v8445_v8 }
 0x213   : > { %6807 = vmatmul.mubr.msk.bf16.gmra.mrb[60].mxu0 %vm8979_vm2, %v8753_v17 }
 0x214   : > { %6826 = vmatprep.mubr.bf16.mxu0 %v9629_v16  ;;  %v7801_v16 = vld [vmem:[#allocation9 + $0x98] sm:$0xff]  }
 0x218   : > { %6971 = vmatmul.mubr.bf16.vlgmr.msra.gmra.mrb[0].mxu1 %v8432_v1 }
 0x219   : > { %7003 = vmatpush3.bf16.msra.mxu1 %v7792_v21  ;;  %6974 = vmatprep.mubr.bf16.mxu1 %v8502_v53  ;;  %v7803_v21 = vld [vmem:[#allocation9 + $0xa0] sm:$0xff]  }
 0x21a   : > { %7004 = vmatprep.subr.bf16.mxu1 %v7793_v32 }
 0x21b   : > { %6827 = vmatmul.mubr.bf16.vlgmr.msra.gmra.mrb[32].mxu0 %v8445_v8  ;;  %v7796_v8 = vld [vmem:[#allocation9 + $0x160] sm:$0xff]  }
 0x21c   : > { %6830 = vmatprep.mubr.bf16.mxu0 %v8432_v1  ;;  %6859 = vmatpush3.bf16.msra.mxu0 %v7797_v61  ;;  %v7799_v61 = vld [vmem:[#allocation9 + $0x168] sm:$0xff]  }
 0x21d   : > { %6860 = vmatprep.subr.bf16.mxu0 %v7798_v42  ;;  %7005 = vmatpush3.bf16.msra.mxu1 %v7793_v32  ;;  %v7804_v32 = vld [vmem:[#allocation9 + $0xa8] sm:$0xff]  }
 0x21e   : > { %7006 = vmatprep.subr.bf16.mxu1 %v7794_v11 }
 0x220   : > { %6861 = vmatpush3.bf16.msra.mxu0 %v7798_v42  ;;  %6975 = vmatmul.mubr.bf16.gmra.mrb[4].mxu1 %v8486_v38  ;;  %v7808_v42 = vld [vmem:[#allocation9 + $0x180] sm:$0xff]  }
 0x221   : > { %6862 = vmatprep.subr.bf16.mxu0 %v7800_v62  ;;  %6978 = vmatprep.mubr.bf16.mxu1 %v8529_v34 }
 0x222   : > { %7007 = vmatpush3.bf16.msra.mxu1 %v7794_v11  ;;  %v7802_v11 = vld [vmem:[#allocation9 + $0x170] sm:$0xff]  }
 0x223   : > { %6831 = vmatmul.mubr.bf16.gmra.mrb[36].mxu0 %v8502_v53  ;;  %7008 = vmatprep.subr.bf16.mxu1 %v7795_v23 }
 0x224   : > { %6834 = vmatprep.mubr.bf16.mxu0 %v8486_v38  ;;  %6863 = vmatpush3.bf16.msra.mxu0 %v7800_v62  ;;  %v7806_v62 = vld [vmem:[#allocation9 + $0xb0] sm:$0xff]  }
 0x225   : > { %6864 = vmatprep.subr.bf16.mxu0 %v7801_v16 }
 0x226   : > { %7009 = vmatpush3.bf16.msra.mxu1 %v7795_v23  ;;  %v7805_v23 = vld [vmem:[#allocation9 + $0x178] sm:$0xff]  }
 0x227   : > { %7010 = vmatprep.subr.bf16.mxu1 %v7796_v8 }
 0x228   : > { %6865 = vmatpush3.bf16.msra.mxu0 %v7801_v16  ;;  %6979 = vmatmul.mubr.bf16.gmra.mrb[8].mxu1 %v8525_v28  ;;  %v7807_v16 = vld [vmem:[#allocation9 + $0xb8] sm:$0xff]  }
 0x229   : > { %6866 = vmatprep.subr.bf16.mxu0 %v7803_v21  ;;  %6982 = vmatprep.mubr.bf16.mxu1 %v8561_v47 }
 0x22a   : > { %7011 = vmatpush3.bf16.msra.mxu1 %v7796_v8  ;;  %v840_v8 = vadd.s32 8, %v8416_v45 }
 0x22b   : > { %6835 = vmatmul.mubr.bf16.gmra.mrb[40].mxu0 %v8529_v34  ;;  %7012 = vmatprep.subr.bf16.mxu1 %v7799_v61 }
 0x22c   : > { %6838 = vmatprep.mubr.bf16.mxu0 %v8525_v28  ;;  %6867 = vmatpush3.bf16.msra.mxu0 %v7803_v21  ;;  %v882_v21 = vand.u32 15, %v840_v8  ;;  %v9757_v8 = vld [vmem:[#allocation24_spill] sm:$0xff] }
 0x22d   : > { %6868 = vmatprep.subr.bf16.mxu0 %v7804_v32 }
 0x22e   : > { %7013 = vmatpush3.bf16.msra.mxu1 %v7799_v61  ;;  %v9753_v61 = vld [vmem:[#allocation36_spill] sm:$0xff]  ;;  %vm6410_vm1 = vcmp.ne.s32.totalorder %v882_v21, 15 }
 0x22f   : > { %7014 = vmatprep.subr.bf16.mxu1 %v7802_v11  ;;  %vm9023_vm2 = vmpackc.low %vm6410_vm1, %vm9633_vm5 }
 0x230   : > { %6869 = vmatpush3.bf16.msra.mxu0 %v7804_v32  ;;  %6983 = vmatmul.mubr.bf16.gmra.mrb[12].mxu1 %v8557_v29  ;;  %v842_v32 = vadd.s32 24, %v8416_v45 }
 0x231   : > { %6870 = vmatprep.subr.bf16.mxu0 %v7806_v62  ;;  %6986 = vmatprep.mubr.bf16.mxu1 %v8596_v44 }
 0x232   : > { %7015 = vmatpush3.bf16.msra.mxu1 %v7802_v11  ;;  %v844_v11 = vadd.s32 40, %v8416_v45 }
 0x233   : > { %6839 = vmatmul.mubr.bf16.gmra.mrb[44].mxu0 %v8561_v47  ;;  %7016 = vmatprep.subr.bf16.mxu1 %v7805_v23 }
 0x234   : > { %6842 = vmatprep.mubr.bf16.mxu0 %v8557_v29  ;;  %6871 = vmatpush3.bf16.msra.mxu0 %v7806_v62  ;;  %v9754_v62 = vmov 0 }
 0x235   : > { %6872 = vmatprep.subr.bf16.mxu0 %v7807_v16  ;;  %v9755_v62 = vsel %vm9023_vm2, 4294967295, %v9754_v62 }
 0x236   : > { %7017 = vmatpush3.bf16.msra.mxu1 %v7805_v23  ;;  %9756 = vst [vmem:[#allocation42_spill] sm:$0xff] %v9755_v62  ;;  %v896_v23 = vand.u32 15, %v842_v32  ;;  %v848_v32 = vadd.s32 72, %v8416_v45  ;;  %v9775_v62 = vld [vmem:[#allocation28_spill] sm:$0xff] }
 0x237   : > { %7050 = vmatprep.subr.bf16.mxu1 %v7808_v42 }
 0x238   : > { %6873 = vmatpush3.bf16.msra.mxu0 %v7807_v16  ;;  %6987 = vmatmul.mubr.bf16.gmra.mrb[16].mxu1 %v8592_v25  ;;  %v910_v16 = vand.u32 15, %v844_v11  ;;  %vm6411_vm1 = vcmp.ne.s32.totalorder %v896_v23, 15  ;;  %v9761_v11 = vmov 0  ;;  %v9768_v23 = vld [vmem:[#allocation27_spill] sm:$0xff] }
 0x239   : > { %6990 = vmatprep.mubr.bf16.mxu1 %v8632_v20  ;;  %vm9040_vm14 = vmpackc.low %vm6411_vm1, %vm9760_vm13 }
 0x23a   : > { %vm6412_vm5 = vcmp.ne.s32.totalorder %v910_v16, 15  ;;  %v9762_v11 = vsel %vm9040_vm14, 4294967295, %v9761_v11  ;;  %v850_v16 = vadd.s32 88, %v8416_v45 }
 0x23b   : > { %6843 = vmatmul.mubr.bf16.gmra.mrb[48].mxu0 %v8596_v44  ;;  %9763 = vst [vmem:[#allocation24_spill] sm:$0xff] %v9762_v11  ;;  %vm9045_vm10 = vmpackc.low %vm6412_vm5, %vm9760_vm13  ;;  %v7811_v11 = vld [vmem:[#allocation9 + $0x198] sm:$0xff]  }
 0x23c   : > { %6846 = vmatprep.mubr.bf16.mxu0 %v8592_v25 }
 0x240   : > { %6991 = vmatmul.mubr.bf16.gmra.mrb[20].mxu1 %v8628_v9 }
 0x241   : > { %6994 = vmatprep.mubr.bf16.mxu1 %v8681_v39 }
 0x243   : > { %6847 = vmatmul.mubr.bf16.gmra.mrb[52].mxu0 %v8632_v20 }
 0x244   : > { %6850 = vmatprep.mubr.bf16.mxu0 %v8628_v9 }
 0x248   : > { %6995 = vmatmul.mubr.bf16.gmra.mrb[24].mxu1 %v9753_v61 }
 0x249   : > { %6998 = vmatprep.mubr.bf16.mxu1 %v8721_v52 }
 0x24b   : > { %6851 = vmatmul.mubr.bf16.gmra.mrb[56].mxu0 %v8681_v39  ;;  %v846_v39 = vadd.s32 56, %v8416_v45 }
 0x24c   : > { %6854 = vmatprep.mubr.bf16.mxu0 %v9753_v61  ;;  %v9758_v61 = vld [vmem:[#allocation23_spill] sm:$0xff] }
 0x24d   : > { %v9759_v21 = vpack.c.bf16 %v9758_v61, %v8426_v59  ;;  %v7809_v61 = vld [vmem:[#allocation9 + $0x188] sm:$0xff]   ;;  %v938_v59 = vand.u32 15, %v848_v32  ;;  %v9769_v32 = vmov 0 }
 0x24f   : > { %vm6414_vm1 = vcmp.ne.s32.totalorder %v938_v59, 15  ;;  %v9776_v59 = vld [vmem:[#allocation29_spill] sm:$0xff] }
 0x250   : > { %6999 = vmatmul.mubr.bf16.gmra.mrb[28].mxu1 %v8717_v15  ;;  %v924_v15 = vand.u32 15, %v846_v39  ;;  %v7810_v39 = vld [vmem:[#allocation9 + $0x190] sm:$0xff]  }
 0x251   : > { %7018 = vmatprep.mubr.msk.bf16.mxu1 %vm9023_vm2, %v9757_v8 }
 0x252   : > { %vm6413_vm5 = vcmp.ne.s32.totalorder %v924_v15, 15  ;;  %v952_v15 = vand.u32 15, %v850_v16  ;;  %v856_v16 = vadd.s32 136, %v8416_v45 }
 0x253   : > { %6855 = vmatmul.mubr.bf16.gmra.mrb[60].mxu0 %v8721_v52  ;;  %v9764_v52 = vmov 0 }
 0x254   : > { %6874 = vmatprep.mubr.msk.bf16.mxu0 %vm9023_vm2, %v9759_v21  ;;  %v9765_v52 = vsel %vm9045_vm10, 4294967295, %v9764_v52  ;;  %v9767_v21 = vld [vmem:[#allocation26_spill] sm:$0xff]  ;;  %vm9064_vm2 = vmpackc.low %vm6413_vm5, %vm9760_vm13  ;;  %vm6415_vm5 = vcmp.ne.s32.totalorder %v952_v15, 15  ;;  %v7813_v15 = vld [vmem:[#allocation9 + $0x1a8] sm:$0xff]  }
 0x255   : > { %9766 = vst [vmem:[#allocation23_spill] sm:$0xff] %v9765_v52  ;;  %v9770_v32 = vsel %vm9064_vm2, 4294967295, %v9769_v32 }
 0x256   : > { %9771 = vst [vmem:[#allocation26_spill] sm:$0xff] %v9770_v32  ;;  %v9777_v32 = vmov 0 }
 0x258   : > { %7019 = vmatmul.mubr.msk.bf16.vlgmr.msra.gmra.mrb[0].mxu1 %vm9040_vm14, %v9767_v21 }
 0x259   : > { %7051 = vmatpush3.bf16.msra.mxu1 %v7808_v42  ;;  %7022 = vmatprep.mubr.msk.bf16.mxu1 %vm9045_vm10, %v9768_v23  ;;  %v852_v42 = vadd.s32 104, %v8416_v45 }
 0x25a   : > { %7052 = vmatprep.subr.bf16.mxu1 %v7809_v61 }
 0x25b   : > { %6875 = vmatmul.mubr.msk.bf16.vlgmr.msra.gmra.mrb[32].mxu0 %vm9040_vm14, %v9757_v8  ;;  %vm9069_vm14 = vmpackc.low %vm6414_vm1, %vm9760_vm13  ;;  %v9772_v8 = vmov 0  ;;  %v966_v52 = vand.u32 15, %v852_v42  ;;  %v7812_v42 = vld [vmem:[#allocation9 + $0x1a0] sm:$0xff]  }
 0x25c   : > { %6878 = vmatprep.mubr.msk.bf16.mxu0 %vm9045_vm10, %v9767_v21  ;;  %v9773_v8 = vsel %vm9069_vm14, 4294967295, %v9772_v8  ;;  %vm9088_vm10 = vmpackc.low %vm6415_vm5, %vm9760_vm13 }
 0x25d   : > { %7053 = vmatpush3.bf16.msra.mxu1 %v7809_v61  ;;  %9774 = vst [vmem:[#allocation43_spill] sm:$0xff] %v9773_v8  ;;  %v854_v61 = vadd.s32 120, %v8416_v45  ;;  %vm6416_vm1 = vcmp.ne.s32.totalorder %v966_v52, 15  ;;  %v9778_v32 = vsel %vm9088_vm10, 4294967295, %v9777_v32  ;;  %v9783_v52 = vld [vmem:[#allocation30_spill] sm:$0xff] }
 0x25e   : > { %7054 = vmatprep.subr.bf16.mxu1 %v7810_v39  ;;  %9779 = vst [vmem:[#allocation44_spill] sm:$0xff] %v9778_v32  ;;  %v9785_v32 = vmov 0 }
 0x25f   : > { %v980_v8 = vand.u32 15, %v854_v61  ;;  %v860_v61 = vadd.s32 168, %v8416_v45 }
 0x260   : > { %7023 = vmatmul.mubr.msk.bf16.gmra.mrb[4].mxu1 %vm9064_vm2, %v9775_v62 }
 0x261   : > { %7026 = vmatprep.mubr.msk.bf16.mxu1 %vm9069_vm14, %v9776_v59  ;;  %7055 = vmatpush3.bf16.msra.mxu1 %v7810_v39  ;;  %v994_v39 = vand.u32 15, %v856_v16  ;;  %vm6417_vm5 = vcmp.ne.s32.totalorder %v980_v8, 15  ;;  %v7814_v16 = vld [vmem:[#allocation9 + $0x1b0] sm:$0xff]   ;;  %v1022_v8 = vand.u32 15, %v860_v61  ;;  %v7816_v61 = vld [vmem:[#allocation9 + $0x1c0] sm:$0xff]  }
 0x262   : > { %7056 = vmatprep.subr.bf16.mxu1 %v7811_v11 }
 0x263   : > { %6879 = vmatmul.mubr.msk.bf16.gmra.mrb[36].mxu0 %vm9064_vm2, %v9768_v23  ;;  %vm9093_vm2 = vmpackc.low %vm6416_vm1, %vm9760_vm13  ;;  %v9780_v23 = vmov 0  ;;  %vm6418_vm1 = vcmp.ne.s32.totalorder %v994_v39, 15  ;;  %v9791_v39 = vld [vmem:[#allocation32_spill] sm:$0xff] }
 0x264   : > { %6882 = vmatprep.mubr.msk.bf16.mxu0 %vm9069_vm14, %v9775_v62  ;;  %v9781_v23 = vsel %vm9093_vm2, 4294967295, %v9780_v23  ;;  %v9784_v62 = vld [vmem:[#allocation31_spill] sm:$0xff]  ;;  %vm9112_vm14 = vmpackc.low %vm6417_vm5, %vm9760_vm13 }
 0x265   : > { %9782 = vst [vmem:[#allocation45_spill] sm:$0xff] %v9781_v23  ;;  %7057 = vmatpush3.bf16.msra.mxu1 %v7811_v11  ;;  %v858_v11 = vadd.s32 152, %v8416_v45  ;;  %v9786_v32 = vsel %vm9112_vm14, 4294967295, %v9785_v32  ;;  %v9843_v41 = vld [vmem:[#allocation43_spill] sm:$0xff]  ;;  %v9846_v18 = vld [vmem:[#allocation44_spill] sm:$0xff] }
 0x266   : > { %7058 = vmatprep.subr.bf16.mxu1 %v7812_v42  ;;  %9787 = vst [vmem:[#allocation46_spill] sm:$0xff] %v9786_v32  ;;  %v9793_v32 = vmov 0 }
 0x267   : > { %v1008_v23 = vand.u32 15, %v858_v11  ;;  %v864_v11 = vadd.s32 200, %v8416_v45 }
 0x268   : > { %7027 = vmatmul.mubr.msk.bf16.gmra.mrb[8].mxu1 %vm9088_vm10, %v9783_v52 }
 0x269   : > { %7030 = vmatprep.mubr.msk.bf16.mxu1 %vm9093_vm2, %v9784_v62  ;;  %7059 = vmatpush3.bf16.msra.mxu1 %v7812_v42  ;;  %v7815_v42 = vld [vmem:[#allocation9 + $0x1b8] sm:$0xff]   ;;  %vm6419_vm5 = vcmp.ne.s32.totalorder %v1008_v23, 15  ;;  %v1050_v23 = vand.u32 15, %v864_v11 }
 0x26a   : > { %7060 = vmatprep.subr.bf16.mxu1 %v7813_v15 }
 0x26b   : > { %6883 = vmatmul.mubr.msk.bf16.gmra.mrb[40].mxu0 %vm9088_vm10, %v9776_v59  ;;  %vm9117_vm10 = vmpackc.low %vm6418_vm1, %vm9760_vm13  ;;  %v9788_v59 = vmov 0  ;;  %vm6420_vm1 = vcmp.ne.s32.totalorder %v1022_v8, 15  ;;  %v9800_v8 = vld [vmem:[#allocation35_spill] sm:$0xff] }
 0x26c   : > { %6886 = vmatprep.mubr.msk.bf16.mxu0 %vm9093_vm2, %v9783_v52  ;;  %v9789_v59 = vsel %vm9117_vm10, 4294967295, %v9788_v59  ;;  %v9792_v52 = vld [vmem:[#allocation33_spill] sm:$0xff]  ;;  %vm9136_vm2 = vmpackc.low %vm6419_vm5, %vm9760_vm13 }
 0x26d   : > { %9790 = vst [vmem:[#allocation47_spill] sm:$0xff] %v9789_v59  ;;  %7061 = vmatpush3.bf16.msra.mxu1 %v7813_v15  ;;  %v862_v15 = vadd.s32 184, %v8416_v45  ;;  %v9794_v32 = vsel %vm9136_vm2, 4294967295, %v9793_v32  ;;  %v9849_v43 = vld [vmem:[#allocation45_spill] sm:$0xff] }
 0x26e   : > { %7062 = vmatprep.subr.bf16.mxu1 %v7814_v16  ;;  %9795 = vst [vmem:[#allocation48_spill] sm:$0xff] %v9794_v32 }
 0x26f   : > { %v1036_v59 = vand.u32 15, %v862_v15  ;;  %v868_v15 = vadd.s32 232, %v8416_v45 }
 0x270   : > { %7031 = vmatmul.mubr.msk.bf16.gmra.mrb[12].mxu1 %vm9112_vm14, %v9791_v39 }
 0x271   : > { %7034 = vmatprep.mubr.msk.bf16.mxu1 %vm9117_vm10, %v9792_v52  ;;  %7063 = vmatpush3.bf16.msra.mxu1 %v7814_v16  ;;  %v9799_v16 = vld [vmem:[#allocation34_spill] sm:$0xff]  ;;  %vm6421_vm5 = vcmp.ne.s32.totalorder %v1036_v59, 15  ;;  %v870_v59 = vadd.s32 248, %v8416_v45 }
 0x272   : > { %7064 = vmatprep.subr.bf16.mxu1 %v7815_v42 }
 0x273   : > { %6887 = vmatmul.mubr.msk.bf16.gmra.mrb[44].mxu0 %vm9112_vm14, %v9784_v62  ;;  %vm9141_vm14 = vmpackc.low %vm6420_vm1, %vm9760_vm13  ;;  %v9796_v62 = vmov 0  ;;  %vm6422_vm1 = vcmp.ne.s32.totalorder %v1050_v23, 15  ;;  %v9806_v23 = vmov 0 }
 0x274   : > { %6890 = vmatprep.mubr.msk.bf16.mxu0 %vm9117_vm10, %v9791_v39  ;;  %v9797_v62 = vsel %vm9141_vm14, 4294967295, %v9796_v62  ;;  %vm9160_vm10 = vmpackc.low %vm6421_vm5, %vm9760_vm13  ;;  %v1078_v39 = vand.u32 15, %v868_v15  ;;  %v1092_v15 = vand.u32 15, %v870_v59  ;;  %v9816_v59 = vld [vmem:[#allocation22_spill] sm:$0xff] }
 0x275   : > { %9798 = vst [vmem:[#allocation49_spill] sm:$0xff] %v9797_v62  ;;  %7065 = vmatpush3.bf16.msra.mxu1 %v7815_v42  ;;  %v866_v42 = vadd.s32 216, %v8416_v45  ;;  %v9805_v62 = vld [vmem:[#allocation38_spill] sm:$0xff] }
 0x276   : > { %7098 = vmatprep.subr.bf16.mxu1 %v7816_v61 }
 0x278   : > { %7035 = vmatmul.mubr.msk.bf16.gmra.mrb[16].mxu1 %vm9136_vm2, %v9799_v16 }
 0x279   : > { %7038 = vmatprep.mubr.msk.bf16.mxu1 %vm9141_vm14, %v9800_v8 }
 0x27b   : > { %6891 = vmatmul.mubr.msk.bf16.gmra.mrb[48].mxu0 %vm9136_vm2, %v9792_v52  ;;  %vm9165_vm2 = vmpackc.low %vm6422_vm1, %vm9760_vm13  ;;  %v1064_v52 = vand.u32 15, %v866_v42  ;;  %vm6424_vm1 = vcmp.ne.s32.totalorder %v1078_v39, 15  ;;  %v9809_v42 = vmov 0  ;;  %v9815_v39 = vpack.c.bf16 %v8808_v40, %v8772_v58  ;;  %v7818_v58 = vld [vmem:[#allocation9 + $0x1d0] sm:$0xff]   ;;  %v9837_v40 = vld [vmem:[#allocation23_spill] sm:$0xff] }
 0x27c   : > { %6894 = vmatprep.mubr.msk.bf16.mxu0 %vm9141_vm14, %v9799_v16  ;;  %vm9188_vm9 = vmpackc.low %vm6424_vm1, %vm9760_vm13 }
 0x27d   : > { %vm6423_vm5 = vcmp.ne.s32.totalorder %v1064_v52, 15  ;;  %v9810_v42 = vsel %vm9188_vm9, 4294967295, %v9809_v42  ;;  %v9814_v52 = vpack.c.bf16 %v8803_v19, %v8785_v57  ;;  %v7819_v19 = vld [vmem:[#allocation9 + $0x1d8] sm:$0xff]  }
 0x27e   : > { %vm9183_vm14 = vmpackc.low %vm6423_vm5, %vm9760_vm13  ;;  %9811 = vst [vmem:[#allocation35_spill] sm:$0xff] %v9810_v42  ;;  %vm6425_vm5 = vcmp.ne.s32.totalorder %v1092_v15, 15  ;;  %v9817_v42 = vld [vmem:[#allocation21_spill] sm:$0xff] }
 0x27f   : > { %v9807_v23 = vsel %vm9183_vm14, 4294967295, %v9806_v23  ;;  %vm9205_vm1 = vmpackc.low %vm6425_vm5, %vm9760_vm13  ;;  %v9818_v15 = vpack.c.bf16 %v9816_v59, %v9817_v42  ;;  %vm9838_vm13 = vnez %v9837_v40  ;;  %v9858_v59 = vld [vmem:[#allocation49_spill] sm:$0xff] }
 0x280   : > { %7039 = vmatmul.mubr.msk.bf16.gmra.mrb[20].mxu1 %vm9160_vm10, %v9805_v62  ;;  %9808 = vst [vmem:[#allocation34_spill] sm:$0xff] %v9807_v23  ;;  %v7817_v23 = vld [vmem:[#allocation9 + $0x1c8] sm:$0xff]  }
 0x281   : > { %7042 = vmatprep.mubr.msk.bf16.mxu1 %vm9165_vm2, %v8735_v14 }
 0x283   : > { %6895 = vmatmul.mubr.msk.bf16.gmra.mrb[52].mxu0 %vm9160_vm10, %v9800_v8 }
 0x284   : > { %6898 = vmatprep.mubr.msk.bf16.mxu0 %vm9165_vm2, %v9805_v62 }
 0x288   : > { %7043 = vmatmul.mubr.msk.bf16.gmra.mrb[24].mxu1 %vm9183_vm14, %v8779_v46 }
 0x289   : > { %7046 = vmatprep.mubr.msk.bf16.mxu1 %vm9188_vm9, %v8798_v12 }
 0x28b   : > { %6899 = vmatmul.mubr.msk.bf16.gmra.mrb[56].mxu0 %vm9183_vm14, %v8735_v14 }
 0x28c   : > { %6902 = vmatprep.mubr.msk.bf16.mxu0 %vm9188_vm9, %v8779_v46 }
 0x290   : > { %7047 = vmatmul.mubr.msk.bf16.gmra.mrb[28].mxu1 %vm9205_vm1, %v9814_v52 }
 0x291   : > { %7066 = vmatprep.mubr.msk.bf16.mxu1 %vm8726_vm6, %v9818_v15  ;;  %vm9819_vm6 = vnez %v9740_v27 }
 0x293   : > { %6903 = vmatmul.mubr.msk.bf16.gmra.mrb[60].mxu0 %vm9205_vm1, %v9815_v39  ;;  %v9856_v39 = vld [vmem:[#allocation48_spill] sm:$0xff] }
 0x298   : > { %7067 = vmatmul.mubr.msk.bf16.vlgmr.msra.gmra.mrb[0].mxu1 %vm8744_vm7, %v8512_v4  ;;  %v7820_v4 = vld [vmem:[#allocation9 + $0x1e0] sm:$0xff]   ;;  %vm9820_vm7 = vnez %v9742_v0  ;;  %v9840_v0 = vld [vmem:[#allocation26_spill] sm:$0xff] }
 0x299   : > { %7099 = vmatpush3.bf16.msra.mxu1 %v7816_v61  ;;  %7070 = vmatprep.mubr.msk.bf16.mxu1 %vm8762_vm8, %v8514_v5  ;;  %v7822_v5 = vld [vmem:[#allocation9 + $0x1f0] sm:$0xff]   ;;  %vm9821_vm8 = vnez %v9744_v36  ;;  %vm9841_vm5 = vnez %v9840_v0 }
 0x29a   : > { %7100 = vmatprep.subr.bf16.mxu1 %v7817_v23 }
 0x29d   : > { %7101 = vmatpush3.bf16.msra.mxu1 %v7817_v23 }
 0x29e   : > { %7102 = vmatprep.subr.bf16.mxu1 %v7818_v58 }
 0x2a0   : > { %7071 = vmatmul.mubr.msk.bf16.gmra.mrb[4].mxu1 %vm8838_vm11, %v8546_v60  ;;  %v7823_v60 = vld [vmem:[#allocation9 + $0x1f8] sm:$0xff]   ;;  %vm9822_vm11 = vnez %v9746_v3 }
 0x2a1   : > { %7074 = vmatprep.mubr.msk.bf16.mxu1 %vm8843_vm12, %v8548_v37  ;;  %7103 = vmatpush3.bf16.msra.mxu1 %v7818_v58  ;;  %v7824_v37 = vld [vmem:[#allocation9 + $0x200] sm:$0xff]   ;;  %vm9823_vm12 = vnez %v9748_v50 }
 0x2a2   : > { %7104 = vmatprep.subr.bf16.mxu1 %v7819_v19 }
 0x2a5   : > { %7105 = vmatpush3.bf16.msra.mxu1 %v7819_v19 }
 0x2a6   : > { %7106 = vmatprep.subr.bf16.mxu1 %v7820_v4 }
 0x2a8   : > { %7075 = vmatmul.mubr.msk.bf16.gmra.mrb[8].mxu1 %vm8862_vm15, %v8578_v6  ;;  %vm9824_vm15 = vnez %v9750_v2  ;;  %v7832_v6 = vld [vmem:[#allocation10] sm:$0xff]   ;;  %v9851_v2 = vld [vmem:[#allocation33_spill] sm:$0xff] }
 0x2a9   : > { %7078 = vmatprep.mubr.msk.bf16.mxu1 %vm8867_vm0, %v8580_v26  ;;  %7107 = vmatpush3.bf16.msra.mxu1 %v7820_v4  ;;  %vm9825_vm0 = vnez %v9752_v7  ;;  %v7835_v26 = vld [vmem:[#allocation10 + $0x18] sm:$0xff]   ;;  %v9852_v7 = vld [vmem:[#allocation46_spill] sm:$0xff] }
 0x2aa   : > { %7108 = vmatprep.subr.bf16.mxu1 %v7821_v63  ;;  %7194 = vmatprep.subr.bf16.mxu0 %v7832_v6 }
 0x2ab   : > { %7195 = vmatpush3.bf16.msra.mxu0 %v7832_v6 }
 0x2ad   : > { %7109 = vmatpush3.bf16.msra.mxu1 %v7821_v63 }
 0x2ae   : > { %7110 = vmatprep.subr.bf16.mxu1 %v7822_v5 }
 0x2b0   : > { %7079 = vmatmul.mubr.msk.bf16.gmra.mrb[12].mxu1 %vm8886_vm3, %v8613_v22  ;;  %v6286_v22 = vpack.c.bf16 %v8421_v54, %v8824_v55  ;;  %v7828_v54 = vld [vmem:[#allocation9 + $0x220] sm:$0xff]   ;;  %v9839_v55 = vld [vmem:[#allocation29_spill] sm:$0xff] }
 0x2b1   : > { %7082 = vmatprep.mubr.msk.bf16.mxu1 %vm8891_vm4, %v8615_v33  ;;  %7111 = vmatpush3.bf16.msra.mxu1 %v7822_v5  ;;  %v9826_v33 = vld [vmem:[#allocation37_spill] sm:$0xff] }
 0x2b2   : > { %7112 = vmatprep.subr.bf16.mxu1 %v7823_v60  ;;  %v7841_v5 = vld [vmem:[#allocation12 + $0x8] sm:$0xff]  }
 0x2b5   : > { %7113 = vmatpush3.bf16.msra.mxu1 %v7823_v60  ;;  %v9861_v60 = vld [vmem:[#allocation41_spill] sm:$0xff] }
 0x2b6   : > { %7146 = vmatprep.subr.bf16.mxu1 %v7824_v37  ;;  %v9862_v11 = vpack.c.bf16 %v9861_v60, %v8785_v57 }
 0x2b8   : > { %7083 = vmatmul.mubr.msk.bf16.gmra.mrb[16].mxu1 %vm9819_vm6, %v8651_v56  ;;  %v9828_v56 = vld [vmem:[#allocation40_spill] sm:$0xff]  ;;  %vm9844_vm6 = vnez %v9843_v41 }
 0x2b9   : > { %7086 = vmatprep.mubr.msk.bf16.mxu1 %vm9820_vm7, %v8653_v10  ;;  %v7827_v10 = vld [vmem:[#allocation9 + $0x218] sm:$0xff]   ;;  %vm9847_vm7 = vnez %v9846_v18 }
 0x2c0   : > { %7087 = vmatmul.mubr.msk.bf16.gmra.mrb[20].mxu1 %vm9821_vm8, %v8697_v13  ;;  %v7825_v13 = vld [vmem:[#allocation9 + $0x208] sm:$0xff]   ;;  %vm9850_vm8 = vnez %v9849_v43 }
 0x2c1   : > { %7090 = vmatprep.mubr.msk.bf16.mxu1 %vm9822_vm11, %v8699_v31  ;;  %v7826_v31 = vld [vmem:[#allocation9 + $0x210] sm:$0xff]   ;;  %vm9853_vm11 = vnez %v9852_v7 }
 0x2c8   : > { %7091 = vmatmul.mubr.msk.bf16.gmra.mrb[24].mxu1 %vm9823_vm12, %v8753_v17  ;;  %v9830_v17 = vmov 0.0|0.0  }
 0x2c9   : > { %7094 = vmatprep.mubr.msk.bf16.mxu1 %vm9824_vm15, %v8755_v51  ;;  %v9834_v51 = vld [vmem:[#allocation24_spill] sm:$0xff]  ;;  %vm9857_vm15 = vnez %v9856_v39 }
 0x2ca   : > { %vm9835_vm4 = vnez %v9834_v51 }
 0x2d0   : > { %7095 = vmatmul.mubr.msk.bf16.gmra.mrb[28].mxu1 %vm9825_vm0, %v6286_v22  ;;  %vm9859_vm0 = vnez %v9858_v59 }
 0x2d1   : > { %7114 = vmatprep.mubr.bf16.mxu1 %v8432_v1  ;;  %v7829_v1 = vld [vmem:[#allocation9 + $0x228] sm:$0xff]  }
 0x2d8   : > { %7115 = vmatmul.mubr.bf16.vlgmr.msra.gmra.mrb[0].mxu1 %v8502_v53  ;;  %v7833_v53 = vld [vmem:[#allocation10 + $0x8] sm:$0xff]  }
 0x2d9   : > { %7147 = vmatpush3.bf16.msra.mxu1 %v7824_v37  ;;  %7118 = vmatprep.mubr.bf16.mxu1 %v8486_v38  ;;  %v7830_v38 = vld [vmem:[#allocation9 + $0x230] sm:$0xff]  }
 0x2da   : > { %7148 = vmatprep.subr.bf16.mxu1 %v7825_v13  ;;  %7196 = vmatprep.subr.bf16.mxu0 %v7833_v53 }
 0x2db   : > { %7197 = vmatpush3.bf16.msra.mxu0 %v7833_v53 }
 0x2dd   : > { %7149 = vmatpush3.bf16.msra.mxu1 %v7825_v13  ;;  %v9864_v13 = vld [vmem:[#allocation25_spill] sm:$0xff] }
 0x2de   : > { %7150 = vmatprep.subr.bf16.mxu1 %v7826_v31 }
 0x2e0   : > { %7119 = vmatmul.mubr.bf16.gmra.mrb[4].mxu1 %v8529_v34  ;;  %v7834_v34 = vld [vmem:[#allocation10 + $0x10] sm:$0xff]  }
 0x2e1   : > { %7122 = vmatprep.mubr.bf16.mxu1 %v8525_v28  ;;  %7151 = vmatpush3.bf16.msra.mxu1 %v7826_v31  ;;  %v7831_v28 = vld [vmem:[#allocation9 + $0x238] sm:$0xff]   ;;  %v9865_v31 = vld [vmem:[#allocation20_spill] sm:$0xff] }
 0x2e2   : > { %7152 = vmatprep.subr.bf16.mxu1 %v7827_v10  ;;  %7198 = vmatprep.subr.bf16.mxu0 %v7834_v34 }
 0x2e3   : > { %7199 = vmatpush3.bf16.msra.mxu0 %v7834_v34 }
 0x2e4   : > { %7200 = vmatprep.subr.bf16.mxu0 %v7835_v26 }
 0x2e5   : > { %7153 = vmatpush3.bf16.msra.mxu1 %v7827_v10  ;;  %v9866_v10 = vpack.c.bf16 %v9864_v13, %v9865_v31  ;;  %v7842_v31 = vld [vmem:[#allocation12 + $0x10] sm:$0xff]  }
 0x2e6   : > { %7154 = vmatprep.subr.bf16.mxu1 %v7828_v54 }
 0x2e7   : > { %7201 = vmatpush3.bf16.msra.mxu0 %v7835_v26 }
 0x2e8   : > { %7123 = vmatmul.mubr.bf16.gmra.mrb[8].mxu1 %v8561_v47  ;;  %v7837_v47 = vld [vmem:[#allocation10 + $0x28] sm:$0xff]  }
 0x2e9   : > { %7126 = vmatprep.mubr.bf16.mxu1 %v8557_v29  ;;  %7155 = vmatpush3.bf16.msra.mxu1 %v7828_v54  ;;  %v7836_v29 = vld [vmem:[#allocation10 + $0x20] sm:$0xff]  }
 0x2ea   : > { %7156 = vmatprep.subr.bf16.mxu1 %v7829_v1  ;;  %7202 = vmatprep.subr.bf16.mxu0 %v7836_v29 }
 0x2eb   : > { %7203 = vmatpush3.bf16.msra.mxu0 %v7836_v29 }
 0x2ec   : > { %7204 = vmatprep.subr.bf16.mxu0 %v7837_v47 }
 0x2ed   : > { %7157 = vmatpush3.bf16.msra.mxu1 %v7829_v1 }
 0x2ee   : > { %7158 = vmatprep.subr.bf16.mxu1 %v7830_v38 }
 0x2ef   : > { %7205 = vmatpush3.bf16.msra.mxu0 %v7837_v47  ;;  %v7839_v47 = vld [vmem:[#allocation10 + $0x38] sm:$0xff]  }
 0x2f0   : > { %7127 = vmatmul.mubr.bf16.gmra.mrb[12].mxu1 %v8596_v44  ;;  %v7838_v44 = vld [vmem:[#allocation10 + $0x30] sm:$0xff]  }
 0x2f1   : > { %7130 = vmatprep.mubr.bf16.mxu1 %v8592_v25  ;;  %7159 = vmatpush3.bf16.msra.mxu1 %v7830_v38  ;;  %v9827_v25 = vld [vmem:[#allocation36_spill] sm:$0xff] }
 0x2f2   : > { %7160 = vmatprep.subr.bf16.mxu1 %v7831_v28  ;;  %7206 = vmatprep.subr.bf16.mxu0 %v7838_v44 }
 0x2f3   : > { %7207 = vmatpush3.bf16.msra.mxu0 %v7838_v44  ;;  %v7840_v44 = vld [vmem:[#allocation12] sm:$0xff]  }
 0x2f4   : > { %7208 = vmatprep.subr.bf16.mxu0 %v7839_v47 }
 0x2f5   : > { %7161 = vmatpush3.bf16.msra.mxu1 %v7831_v28 }
 0x2f7   : > { %7209 = vmatpush3.bf16.msra.mxu0 %v7839_v47 }
 0x2f8   : > { %7131 = vmatmul.mubr.bf16.gmra.mrb[16].mxu1 %v8632_v20  ;;  %v9831_v20 = vld [vmem:[#allocation42_spill] sm:$0xff]  ;;  %7242 = vmatprep.subr.bf16.mxu0 %v7840_v44 }
 0x2f9   : > { %7134 = vmatprep.mubr.bf16.mxu1 %v8628_v9  ;;  %vm9832_vm3 = vnez %v9831_v20  ;;  %v9833_v9 = vld [vmem:[#allocation27_spill] sm:$0xff] }
 0x300   : > { %7135 = vmatmul.mubr.bf16.gmra.mrb[20].mxu1 %v9826_v33 }
 0x301   : > { %7138 = vmatprep.mubr.bf16.mxu1 %v9827_v25  ;;  %v9393_v25 = vld [vmem:[%s9597_s4] ss:$0 sm:$0xff] }
 0x308   : > { %7139 = vmatmul.mubr.bf16.gmra.mrb[24].mxu1 %v9828_v56 }
 0x309   : > { %7142 = vmatprep.mubr.bf16.mxu1 %v9829_v30 }
 0x310   : > { %7143 = vmatmul.mubr.bf16.gmra.mrb[28].mxu1 %v9830_v17 }
 0x311   : > { %7162 = vmatprep.mubr.msk.bf16.mxu1 %vm9832_vm3, %v9767_v21  ;;  %v9854_v21 = vld [vmem:[#allocation47_spill] sm:$0xff] }
 0x312   : > { %vm9855_vm12 = vnez %v9854_v21 }
 0x318   : > { %7163 = vmatmul.mubr.msk.bf16.vlgmr.msra.gmra.mrb[0].mxu1 %vm9835_vm4, %v9833_v9 }
 0x319   : > { %7166 = vmatprep.mubr.msk.bf16.mxu1 %vm9838_vm13, %v9836_v48 }
 0x320   : > { %7167 = vmatmul.mubr.msk.bf16.gmra.mrb[4].mxu1 %vm9841_vm5, %v9839_v55 }
 0x321   : > { %7170 = vmatprep.mubr.msk.bf16.mxu1 %vm9844_vm6, %v9842_v24 }
 0x328   : > { %7171 = vmatmul.mubr.msk.bf16.gmra.mrb[8].mxu1 %vm9847_vm7, %v9845_v49 }
 0x329   : > { %7174 = vmatprep.mubr.msk.bf16.mxu1 %vm9850_vm8, %v9848_v35 }
 0x32e   : > { %v6876_v27 = vpop.f32.mrb[32].mxu0 }
 0x32f   : > { %v2399_v36 = vpop.f32.mrb[33].mxu0 }
 0x330   : > { %v6877_v3 = vpop.f32.mrb[34].mxu0  ;;  %7175 = vmatmul.mubr.msk.bf16.gmra.mrb[12].mxu1 %vm9853_vm11, %v9851_v2 }
 0x331   : > { %v2402_v50 = vpop.f32.mrb[35].mxu0  ;;  %7178 = vmatprep.mubr.msk.bf16.mxu1 %vm9855_vm12, %v9799_v16 }
 0x336   : > { %v6880_v61 = vpop.f32.mrb[36].mxu0 }
 0x337   : > { %v2415_v23 = vpop.f32.mrb[37].mxu0 }
 0x338   : > { %v9313_v42 = vpop.f32.mrb[38].mxu0  ;;  %7179 = vmatmul.mubr.msk.bf16.gmra.mrb[16].mxu1 %vm9857_vm15, %v9800_v8 }
 0x339   : > { %v9315_v52 = vpop.f32.mrb[39].mxu0  ;;  %7182 = vmatprep.mubr.msk.bf16.mxu1 %vm9859_vm0, %v9805_v62 }
 0x33e   : > { %v9323_v15 = vpop.f32.mrb[40].mxu0 }
 0x33f   : > { %v9325_v58 = vpop.f32.mrb[41].mxu0 }
 0x340   : > { %v9327_v19 = vpop.f32.mrb[42].mxu0  ;;  %7183 = vmatmul.mubr.msk.bf16.gmra.mrb[20].mxu1 %vm9160_vm10, %v8735_v14 }
 0x341   : > { %v9329_v16 = vpop.f32.mrb[43].mxu0  ;;  %7186 = vmatprep.mubr.msk.bf16.mxu1 %vm9165_vm2, %v8779_v46 }
 0x346   : > { %v9337_v8 = vpop.f32.mrb[44].mxu0 }
 0x347   : > { %v9339_v4 = vpop.f32.mrb[45].mxu0 }
 0x348   : > { %v9341_v62 = vpop.f32.mrb[46].mxu0  ;;  %7187 = vmatmul.mubr.msk.bf16.gmra.mrb[24].mxu1 %vm9183_vm14, %v8798_v12 }
 0x349   : > { %v9343_v63 = vpop.f32.mrb[47].mxu0  ;;  %7190 = vmatprep.mubr.msk.bf16.mxu1 %vm9188_vm9, %v9862_v11 }
 0x34e   : > { %v9353_v32 = vpop.f32.mrb[48].mxu0 }
 0x34f   : > { %v9355_v46 = vpop.f32.mrb[49].mxu0 }
 0x350   : > { %v9357_v37 = vpop.f32.mrb[50].mxu0  ;;  %7191 = vmatmul.mubr.msk.bf16.gmra.mrb[28].mxu1 %vm9205_vm1, %v9866_v10 }
 0x351   : > { %v9359_v22 = vpop.f32.mrb[51].mxu0 }
 0x356   : > { %v9366_v12 = vpop.f32.mrb[52].mxu0 }
 0x357   : > { %v9368_v57 = vpop.f32.mrb[53].mxu0 }
 0x358   : > { %v9370_v54 = vpop.f32.mrb[54].mxu0 }
 0x359   : > { %v9372_v1 = vpop.f32.mrb[55].mxu0 }
 0x35e   : > { %v9374_v6 = vpop.f32.mrb[56].mxu0 }
 0x35f   : > { %v9376_v53 = vpop.f32.mrb[57].mxu0 }
 0x360   : > { %v9378_v38 = vpop.f32.mrb[58].mxu0 }
 0x361   : > { %v9380_v34 = vpop.f32.mrb[59].mxu0 }
 0x366   : > { %v9382_v28 = vpop.f32.mrb[60].mxu0 }
 0x367   : > { %v9384_v45 = vpop.f32.mrb[61].mxu0 }
 0x368   : > { %v9386_v26 = vpop.f32.mrb[62].mxu0 }
 0x369   : > { %v9388_v29 = vpop.f32.mrb[63].mxu0 }
 0x3eb   : > { %v7164_v33 = vpop.f32.mrb[0].mxu1 }
 0x3ec   : > { %v7290_v56 = vadd.f32 %v7164_v33, %v6876_v27  ;;  %v4875_v30 = vpop.f32.mrb[1].mxu1 }
 0x3ed   : > { %v7291_v17 = vadd.f32 %v4875_v30, %v2399_v36  ;;  %v7165_v20 = vpop.f32.mrb[2].mxu1 }
 0x3ee   : > { %v5107_v9 = vadd.f32 %v7290_v56, %v9393_v25  ;;  %v7292_v51 = vadd.f32 %v7165_v20, %v6877_v3  ;;  %v4878_v48 = vpop.f32.mrb[3].mxu1 }
 0x3ef   : > { %v5105_v40 = vadd.f32 %v7291_v17, %v9393_v25  ;;  %v7293_v55 = vadd.f32 %v4878_v48, %v2402_v50  ;;  %v7843_v48 = vld [vmem:[#allocation12 + $0x18] sm:$0xff]  }
 0x3f0   : > { %v5108_v0 = vadd.f32 %v7292_v51, %v9393_v25  ;;  %v5139_v41 = vmax.f32 %v5107_v9, 0.0 }
 0x3f1   : > { %v5106_v24 = vadd.f32 %v7293_v55, %v9393_v25  ;;  %v5137_v18 = vmax.f32 %v5105_v40, 0.0 }
 0x3f2   : > { %v5140_v49 = vmax.f32 %v5108_v0, 0.0 }
 0x3f3   : > { %v5138_v35 = vmax.f32 %v5106_v24, 0.0  ;;  %v7168_v43 = vpop.f32.mrb[4].mxu1 }
 0x3f4   : > { %v5170_v27 = vpack.c.bf16 %v5140_v49, %v5139_v41  ;;  %v7294_v2 = vadd.f32 %v7168_v43, %v6880_v61  ;;  %v4891_v36 = vpop.f32.mrb[5].mxu1  ;;  %v7844_v41 = vld [vmem:[#allocation12 + $0x20] sm:$0xff]  }
 0x3f5   : > { %v7295_v7 = vadd.f32 %v4891_v36, %v2415_v23  ;;  %v7169_v21 = vpop.f32.mrb[6].mxu1  ;;  %v5169_v39 = vpack.c.bf16 %v5138_v35, %v5137_v18 }
 0x3f6   : > { %v5111_v3 = vadd.f32 %v7294_v2, %v9393_v25  ;;  %v7296_v59 = vadd.f32 %v7169_v21, %v9313_v42  ;;  %v4894_v50 = vpop.f32.mrb[7].mxu1 }
 0x3f7   : > { %v5109_v60 = vadd.f32 %v7295_v7, %v9393_v25  ;;  %v7297_v11 = vadd.f32 %v4894_v50, %v9315_v52  ;;  %7210 = vmatprep.mubr.bf16.mxu0 %v5169_v39 }
 0x3f8   : > { %v5112_v14 = vadd.f32 %v7296_v59, %v9393_v25  ;;  %7211 = vmatmul.mubr.bf16.vlgmr.msra.gmra.mrb[64].mxu0 %v5170_v27  ;;  %v5143_v23 = vmax.f32 %v5111_v3, 0.0  ;;  %v7845_v3 = vld [vmem:[#allocation12 + $0x28] sm:$0xff]  }
 0x3f9   : > { %v5110_v61 = vadd.f32 %v7297_v11, %v9393_v25  ;;  %7243 = vmatpush3.bf16.msra.mxu0 %v7840_v44  ;;  %v5141_v10 = vmax.f32 %v5109_v60, 0.0  ;;  %v7846_v11 = vld [vmem:[#allocation12 + $0x30] sm:$0xff]  }
 0x3fa   : > { %v5144_v13 = vmax.f32 %v5112_v14, 0.0  ;;  %7244 = vmatprep.subr.bf16.mxu0 %v7841_v5 }
 0x3fb   : > { %v5142_v47 = vmax.f32 %v5110_v61, 0.0  ;;  %v7172_v42 = vpop.f32.mrb[8].mxu1 }
 0x3fc   : > { %v7298_v33 = vadd.f32 %v7172_v42, %v9323_v15  ;;  %v4907_v56 = vpop.f32.mrb[9].mxu1  ;;  %v5172_v30 = vpack.c.bf16 %v5144_v13, %v5143_v23 }
 0x3fd   : > { %v7299_v52 = vadd.f32 %v4907_v56, %v9325_v58  ;;  %v7173_v17 = vpop.f32.mrb[10].mxu1  ;;  %v5171_v20 = vpack.c.bf16 %v5142_v47, %v5141_v10  ;;  %7245 = vmatpush3.bf16.msra.mxu0 %v7841_v5 }
 0x3fe   : > { %v5115_v9 = vadd.f32 %v7298_v33, %v9393_v25  ;;  %v7300_v44 = vadd.f32 %v7173_v17, %v9327_v19  ;;  %v4910_v51 = vpop.f32.mrb[11].mxu1  ;;  %7246 = vmatprep.subr.bf16.mxu0 %v7842_v31 }
 0x3ff   : > { %v5113_v40 = vadd.f32 %v7299_v52, %v9393_v25  ;;  %v7301_v55 = vadd.f32 %v4910_v51, %v9329_v16  ;;  %7214 = vmatprep.mubr.bf16.mxu0 %v5171_v20 }
 0x400   : > { %v5116_v15 = vadd.f32 %v7300_v44, %v9393_v25  ;;  %7215 = vmatmul.mubr.bf16.gmra.mrb[68].mxu0 %v5172_v30  ;;  %v5147_v0 = vmax.f32 %v5115_v9, 0.0  ;;  %v7847_v30 = vld [vmem:[#allocation12 + $0x38] sm:$0xff]  }
 0x401   : > { %v5114_v58 = vadd.f32 %v7301_v55, %v9393_v25  ;;  %7247 = vmatpush3.bf16.msra.mxu0 %v7842_v31  ;;  %v5145_v49 = vmax.f32 %v5113_v40, 0.0 }
 0x402   : > { %v5148_v24 = vmax.f32 %v5116_v15, 0.0  ;;  %7248 = vmatprep.subr.bf16.mxu0 %v7843_v48 }
 0x403   : > { %v5146_v19 = vmax.f32 %v5114_v58, 0.0  ;;  %v7176_v18 = vpop.f32.mrb[12].mxu1 }
 0x404   : > { %v7302_v35 = vadd.f32 %v7176_v18, %v9337_v8  ;;  %v4923_v43 = vpop.f32.mrb[13].mxu1  ;;  %v5174_v27 = vpack.c.bf16 %v5148_v24, %v5147_v0 }
 0x405   : > { %v7303_v16 = vadd.f32 %v4923_v43, %v9339_v4  ;;  %v7177_v2 = vpop.f32.mrb[14].mxu1  ;;  %v5173_v36 = vpack.c.bf16 %v5146_v19, %v5145_v49  ;;  %7249 = vmatpush3.bf16.msra.mxu0 %v7843_v48 }
 0x406   : > { %v5119_v7 = vadd.f32 %v7302_v35, %v9393_v25  ;;  %v7304_v21 = vadd.f32 %v7177_v2, %v9341_v62  ;;  %v4926_v39 = vpop.f32.mrb[15].mxu1  ;;  %7250 = vmatprep.subr.bf16.mxu0 %v7844_v41 }
 0x407   : > { %v5117_v59 = vadd.f32 %v7303_v16, %v9393_v25  ;;  %v7305_v50 = vadd.f32 %v4926_v39, %v9343_v63  ;;  %7218 = vmatprep.mubr.bf16.mxu0 %v5173_v36 }
 0x408   : > { %v5120_v8 = vadd.f32 %v7304_v21, %v9393_v25  ;;  %7219 = vmatmul.mubr.bf16.gmra.mrb[72].mxu0 %v5174_v27  ;;  %v5151_v5 = vmax.f32 %v5119_v7, 0.0 }
 0x409   : > { %v5118_v4 = vadd.f32 %v7305_v50, %v9393_v25  ;;  %7251 = vmatpush3.bf16.msra.mxu0 %v7844_v41  ;;  %v5149_v14 = vmax.f32 %v5117_v59, 0.0 }
 0x40a   : > { %v5152_v60 = vmax.f32 %v5120_v8, 0.0  ;;  %7252 = vmatprep.subr.bf16.mxu0 %v7845_v3 }
 0x40b   : > { %v5150_v62 = vmax.f32 %v5118_v4, 0.0  ;;  %v7180_v61 = vpop.f32.mrb[16].mxu1 }
 0x40c   : > { %v7306_v23 = vadd.f32 %v7180_v61, %v9353_v32  ;;  %v4939_v13 = vpop.f32.mrb[17].mxu1  ;;  %v5176_v31 = vpack.c.bf16 %v5152_v60, %v5151_v5 }
 0x40d   : > { %v7307_v63 = vadd.f32 %v4939_v13, %v9355_v46  ;;  %v7181_v10 = vpop.f32.mrb[18].mxu1  ;;  %v5175_v47 = vpack.c.bf16 %v5150_v62, %v5149_v14  ;;  %7253 = vmatpush3.bf16.msra.mxu0 %v7845_v3 }
 0x40e   : > { %v5123_v42 = vadd.f32 %v7306_v23, %v9393_v25  ;;  %v7308_v33 = vadd.f32 %v7181_v10, %v9357_v37  ;;  %v4942_v56 = vpop.f32.mrb[19].mxu1  ;;  %7254 = vmatprep.subr.bf16.mxu0 %v7846_v11 }
 0x40f   : > { %v5121_v52 = vadd.f32 %v7307_v63, %v9393_v25  ;;  %v7309_v17 = vadd.f32 %v4942_v56, %v9359_v22  ;;  %7222 = vmatprep.mubr.bf16.mxu0 %v5175_v47 }
 0x410   : > { %v5124_v32 = vadd.f32 %v7308_v33, %v9393_v25  ;;  %7223 = vmatmul.mubr.bf16.gmra.mrb[76].mxu0 %v5176_v31  ;;  %v5155_v20 = vmax.f32 %v5123_v42, 0.0 }
 0x411   : > { %v5122_v46 = vadd.f32 %v7309_v17, %v9393_v25  ;;  %7255 = vmatpush3.bf16.msra.mxu0 %v7846_v11  ;;  %v5153_v44 = vmax.f32 %v5121_v52, 0.0 }
 0x412   : > { %v5156_v9 = vmax.f32 %v5124_v32, 0.0  ;;  %7256 = vmatprep.subr.bf16.mxu0 %v7847_v30  ;;  %v7849_v32 = vld [vmem:[%s8375_s29 + $0x8] sm:$0xff]  }
 0x413   : > { %v5154_v51 = vmax.f32 %v5122_v46, 0.0  ;;  %v7184_v37 = vpop.f32.mrb[20].mxu1  ;;  %v7850_v46 = vld [vmem:[%s8375_s29 + $0x10] sm:$0xff]  }
 0x414   : > { %v7310_v48 = vadd.f32 %v7184_v37, %v9366_v12  ;;  %v4955_v40 = vpop.f32.mrb[21].mxu1  ;;  %v5178_v55 = vpack.c.bf16 %v5156_v9, %v5155_v20  ;;  %v7852_v20 = vld [vmem:[%s8375_s29 + $0x20] sm:$0xff]   ;;  %v7853_v9 = vld [vmem:[%s8375_s29 + $0x28] sm:$0xff]  }
 0x415   : > { %v7311_v15 = vadd.f32 %v4955_v40, %v9368_v57  ;;  %v7185_v22 = vpop.f32.mrb[22].mxu1  ;;  %v5177_v58 = vpack.c.bf16 %v5154_v51, %v5153_v44  ;;  %7257 = vmatpush3.bf16.msra.mxu0 %v7847_v30  ;;  %v7854_v44 = vld [vmem:[%s8375_s29 + $0x30] sm:$0xff]   ;;  %v7855_v51 = vld [vmem:[%s8375_s29 + $0x38] sm:$0xff]   ;;  %v7856_v37 = vld [vmem:[%s8375_s29 + $0x40] sm:$0xff]  }
 0x416   : > { %v5127_v0 = vadd.f32 %v7310_v48, %v9393_v25  ;;  %v7312_v24 = vadd.f32 %v7185_v22, %v9370_v54  ;;  %v4958_v41 = vpop.f32.mrb[23].mxu1  ;;  %v7857_v48 = vld [vmem:[%s8375_s29 + $0x48] sm:$0xff]   ;;  %v7858_v40 = vld [vmem:[%s8375_s29 + $0x50] sm:$0xff]  }
 0x417   : > { %v5125_v49 = vadd.f32 %v7311_v15, %v9393_v25  ;;  %v7313_v19 = vadd.f32 %v4958_v41, %v9372_v1  ;;  %7226 = vmatprep.mubr.bf16.mxu0 %v5177_v58  ;;  %v7860_v15 = vld [vmem:[%s8375_s29 + $0x60] sm:$0xff]   ;;  %v7861_v22 = vld [vmem:[%s8375_s29 + $0x68] sm:$0xff]   ;;  %v7862_v58 = vld [vmem:[%s8375_s29 + $0x70] sm:$0xff]  }
 0x418   : > { %v5128_v18 = vadd.f32 %v7312_v24, %v9393_v25  ;;  %7227 = vmatmul.mubr.bf16.gmra.mrb[80].mxu0 %v5178_v55  ;;  %v5159_v35 = vmax.f32 %v5127_v0, 0.0  ;;  %v7859_v55 = vld [vmem:[%s8375_s29 + $0x58] sm:$0xff]   ;;  %v6369_v24 = vld [vmem:[%s9599_s6] ss:$0 sm:$0xff] }
 0x419   : > { %v5126_v12 = vadd.f32 %v7313_v19, %v9393_v25  ;;  %v5157_v43 = vmax.f32 %v5125_v49, 0.0  ;;  %v7863_v0 = vld [vmem:[%s8375_s29 + $0x78] sm:$0xff]   ;;  %v6378_v41 = vld [vmem:[%s9601_s8] ss:$0 sm:$0xff] }
 0x41a   : > { %v5160_v57 = vmax.f32 %v5128_v18, 0.0  ;;  %v9475_v49 = vadd.f32 %v6378_v41, %v6369_v24 }
 0x41b   : > { %v5158_v27 = vmax.f32 %v5126_v12, 0.0  ;;  %v7188_v16 = vpop.f32.mrb[24].mxu1 }
 0x41c   : > { %v7314_v2 = vadd.f32 %v7188_v16, %v9374_v6  ;;  %v4971_v36 = vpop.f32.mrb[25].mxu1  ;;  %v5180_v54 = vpack.c.bf16 %v5160_v57, %v5159_v35 }
 0x41d   : > { %v7315_v7 = vadd.f32 %v4971_v36, %v9376_v53  ;;  %v7189_v21 = vpop.f32.mrb[26].mxu1  ;;  %v5179_v39 = vpack.c.bf16 %v5158_v27, %v5157_v43 }
 0x41e   : > { %v5131_v1 = vadd.f32 %v7314_v2, %v9393_v25  ;;  %v7316_v3 = vadd.f32 %v7189_v21, %v9378_v38  ;;  %v4974_v59 = vpop.f32.mrb[27].mxu1 }
 0x41f   : > { %v5129_v50 = vadd.f32 %v7315_v7, %v9393_v25  ;;  %v7317_v8 = vadd.f32 %v4974_v59, %v9380_v34  ;;  %7230 = vmatprep.mubr.bf16.mxu0 %v5179_v39 }
 0x420   : > { %v5132_v4 = vadd.f32 %v7316_v3, %v9393_v25  ;;  %7231 = vmatmul.mubr.bf16.gmra.mrb[84].mxu0 %v5180_v54  ;;  %v5163_v5 = vmax.f32 %v5131_v1, 0.0 }
 0x421   : > { %v5130_v6 = vadd.f32 %v7317_v8, %v9393_v25  ;;  %v5161_v53 = vmax.f32 %v5129_v50, 0.0 }
 0x422   : > { %v5164_v60 = vmax.f32 %v5132_v4, 0.0 }
 0x423   : > { %v5162_v11 = vmax.f32 %v5130_v6, 0.0  ;;  %v7192_v14 = vpop.f32.mrb[28].mxu1 }
 0x424   : > { %v7318_v62 = vadd.f32 %v7192_v14, %v9382_v28  ;;  %v4987_v61 = vpop.f32.mrb[29].mxu1  ;;  %v5182_v38 = vpack.c.bf16 %v5164_v60, %v5163_v5 }
 0x425   : > { %v7319_v23 = vadd.f32 %v4987_v61, %v9384_v45  ;;  %v7193_v13 = vpop.f32.mrb[30].mxu1  ;;  %v5181_v31 = vpack.c.bf16 %v5162_v11, %v5161_v53 }
 0x426   : > { %v5135_v34 = vadd.f32 %v7318_v62, %v9393_v25  ;;  %v7320_v63 = vadd.f32 %v7193_v13, %v9386_v26  ;;  %v4990_v10 = vpop.f32.mrb[31].mxu1 }
 0x427   : > { %v5133_v47 = vadd.f32 %v7319_v23, %v9393_v25  ;;  %v7321_v42 = vadd.f32 %v4990_v10, %v9388_v29  ;;  %7234 = vmatprep.mubr.bf16.mxu0 %v5181_v31  ;;  %v7848_v29 = vld [vmem:[%s8375_s29] sm:$0xff]  }
 0x428   : > { %v5136_v28 = vadd.f32 %v7320_v63, %v9393_v25  ;;  %7235 = vmatmul.mubr.bf16.gmra.mrb[88].mxu0 %v5182_v38  ;;  %v5167_v33 = vmax.f32 %v5135_v34, 0.0 }
 0x429   : > { %v5134_v45 = vadd.f32 %v7321_v42, %v9393_v25  ;;  %v5165_v30 = vmax.f32 %v5133_v47, 0.0  ;;  %v7851_v25 = vld [vmem:[%s8375_s29 + $0x18] sm:$0xff]  }
 0x42a   : > { %v5168_v56 = vmax.f32 %v5136_v28, 0.0 }
 0x42b   : > { %v5166_v26 = vmax.f32 %v5134_v45, 0.0 }
 0x42c   : > { %v5184_v52 = vpack.c.bf16 %v5168_v56, %v5167_v33 }
 0x42d   : > { %v5183_v17 = vpack.c.bf16 %v5166_v26, %v5165_v30 }
 0x42f   : > { %7238 = vmatprep.mubr.bf16.mxu0 %v5183_v17 }
 0x430   : > { %7239 = vmatmul.mubr.bf16.gmra.mrb[92].mxu0 %v5184_v52 }
 0x431   : > { %7258 = vmatprep.mubr.bf16.mxu0 %v7848_v29 }
 0x438   : > { %7259 = vmatmul.mubr.bf16.vlgmr.msra.gmra.mrb[64].mxu0 %v7849_v32 }
 0x439   : > { %7262 = vmatprep.mubr.bf16.mxu0 %v7850_v46 }
 0x440   : > { %7263 = vmatmul.mubr.bf16.gmra.mrb[68].mxu0 %v7851_v25 }
 0x441   : > { %7266 = vmatprep.mubr.bf16.mxu0 %v7852_v20 }
 0x448   : > { %7267 = vmatmul.mubr.bf16.gmra.mrb[72].mxu0 %v7853_v9 }
 0x449   : > { %7270 = vmatprep.mubr.bf16.mxu0 %v7854_v44 }
 0x450   : > { %7271 = vmatmul.mubr.bf16.gmra.mrb[76].mxu0 %v7855_v51 }
 0x451   : > { %7274 = vmatprep.mubr.bf16.mxu0 %v7856_v37 }
 0x458   : > { %7275 = vmatmul.mubr.bf16.gmra.mrb[80].mxu0 %v7857_v48 }
 0x459   : > { %7278 = vmatprep.mubr.bf16.mxu0 %v7858_v40 }
 0x460   : > { %7279 = vmatmul.mubr.bf16.gmra.mrb[84].mxu0 %v7859_v55 }
 0x461   : > { %7282 = vmatprep.mubr.bf16.mxu0 %v7860_v15 }
 0x468   : > { %7283 = vmatmul.mubr.bf16.gmra.mrb[88].mxu0 %v7861_v22 }
 0x469   : > { %7286 = vmatprep.mubr.bf16.mxu0 %v7862_v58 }
 0x470   : > { %7287 = vmatmul.mubr.bf16.gmra.mrb[92].mxu0 %v7863_v0 }
 0x50b   : > { %v7260_v19 = vpop.f32.mrb[64].mxu0 }
 0x50c   : > { %v7322_v18 = vadd.f32 %v7260_v19, %v6369_v24  ;;  %v5522_v12 = vpop.f32.mrb[65].mxu0 }
 0x50d   : > { %v7324_v35 = vadd.f32 %v6369_v24, %v5522_v12  ;;  %v7261_v57 = vpop.f32.mrb[66].mxu0 }
 0x50e   : > { %v7323_v43 = vadd.f32 %v7322_v18, %v6378_v41  ;;  %v7327_v27 = vadd.f32 %v9475_v49, %v7261_v57  ;;  %v5525_v16 = vpop.f32.mrb[67].mxu0 }
 0x50f   : > { %v7325_v2 = vadd.f32 %v7324_v35, %v6378_v41  ;;  %v7329_v36 = vadd.f32 %v9475_v49, %v5525_v16 }
 0x510   : > { %v5683_v54 = vmax.f32 %v7323_v43, 0.0  ;;  %v5684_v7 = vmax.f32 %v7327_v27, 0.0 }
 0x511   : > { %v5681_v21 = vmax.f32 %v7325_v2, 0.0  ;;  %v5682_v39 = vmax.f32 %v7329_v36, 0.0 }
 0x512   : > { %5715 = vst [vmem:[%s9480_s16 + $0x10] sm:$0xff] %v5683_v54  ;;  %5716 = vst [vmem:[%s9480_s16 + $0x18] sm:$0xff] %v5684_v7 }
 0x513   : > { %5713 = vst [vmem:[%s9480_s16] sm:$0xff] %v5681_v21  ;;  %5714 = vst [vmem:[%s9480_s16 + $0x8] sm:$0xff] %v5682_v39  ;;  %v7264_v1 = vpop.f32.mrb[68].mxu0 }
 0x514   : > { %v7331_v3 = vadd.f32 %v9475_v49, %v7264_v1  ;;  %v5538_v59 = vpop.f32.mrb[69].mxu0 }
 0x515   : > { %v7333_v50 = vadd.f32 %v9475_v49, %v5538_v59  ;;  %v7265_v8 = vpop.f32.mrb[70].mxu0 }
 0x516   : > { %v5687_v4 = vmax.f32 %v7331_v3, 0.0  ;;  %v7335_v6 = vadd.f32 %v9475_v49, %v7265_v8  ;;  %v5541_v5 = vpop.f32.mrb[71].mxu0 }
 0x517   : > { %v5685_v60 = vmax.f32 %v7333_v50, 0.0  ;;  %v7337_v53 = vadd.f32 %v9475_v49, %v5541_v5 }
 0x518   : > { %5719 = vst [vmem:[%s9480_s16 + $0x30] sm:$0xff] %v5687_v4  ;;  %v5688_v11 = vmax.f32 %v7335_v6, 0.0 }
 0x519   : > { %5717 = vst [vmem:[%s9480_s16 + $0x20] sm:$0xff] %v5685_v60  ;;  %v5686_v14 = vmax.f32 %v7337_v53, 0.0 }
 0x51a   : > { %5720 = vst [vmem:[%s9480_s16 + $0x38] sm:$0xff] %v5688_v11 }
 0x51b   : > { %5718 = vst [vmem:[%s9480_s16 + $0x28] sm:$0xff] %v5686_v14  ;;  %v7268_v62 = vpop.f32.mrb[72].mxu0 }
 0x51c   : > { %v7339_v61 = vadd.f32 %v9475_v49, %v7268_v62  ;;  %v5554_v38 = vpop.f32.mrb[73].mxu0 }
 0x51d   : > { %v7341_v23 = vadd.f32 %v9475_v49, %v5554_v38  ;;  %v7269_v13 = vpop.f32.mrb[74].mxu0 }
 0x51e   : > { %v5691_v31 = vmax.f32 %v7339_v61, 0.0  ;;  %v7343_v34 = vadd.f32 %v9475_v49, %v7269_v13  ;;  %v5557_v63 = vpop.f32.mrb[75].mxu0 }
 0x51f   : > { %v5689_v10 = vmax.f32 %v7341_v23, 0.0  ;;  %v7345_v47 = vadd.f32 %v9475_v49, %v5557_v63 }
 0x520   : > { %5723 = vst [vmem:[%s9480_s16 + $0x50] sm:$0xff] %v5691_v31  ;;  %v5692_v42 = vmax.f32 %v7343_v34, 0.0 }
 0x521   : > { %5721 = vst [vmem:[%s9480_s16 + $0x40] sm:$0xff] %v5689_v10  ;;  %v5690_v28 = vmax.f32 %v7345_v47, 0.0 }
 0x522   : > { %5724 = vst [vmem:[%s9480_s16 + $0x58] sm:$0xff] %v5692_v42 }
 0x523   : > { %5722 = vst [vmem:[%s9480_s16 + $0x48] sm:$0xff] %v5690_v28  ;;  %v7272_v45 = vpop.f32.mrb[76].mxu0 }
 0x524   : > { %v7347_v33 = vadd.f32 %v9475_v49, %v7272_v45  ;;  %v5570_v56 = vpop.f32.mrb[77].mxu0 }
 0x525   : > { %v7349_v30 = vadd.f32 %v9475_v49, %v5570_v56  ;;  %v7273_v26 = vpop.f32.mrb[78].mxu0 }
 0x526   : > { %v5695_v52 = vmax.f32 %v7347_v33, 0.0  ;;  %v7351_v17 = vadd.f32 %v9475_v49, %v7273_v26  ;;  %v5573_v29 = vpop.f32.mrb[79].mxu0 }
 0x527   : > { %v5693_v32 = vmax.f32 %v7349_v30, 0.0  ;;  %v7353_v46 = vadd.f32 %v9475_v49, %v5573_v29 }
 0x528   : > { %5727 = vst [vmem:[%s9480_s16 + $0x70] sm:$0xff] %v5695_v52  ;;  %v5696_v25 = vmax.f32 %v7351_v17, 0.0 }
 0x529   : > { %5725 = vst [vmem:[%s9480_s16 + $0x60] sm:$0xff] %v5693_v32  ;;  %v5694_v20 = vmax.f32 %v7353_v46, 0.0 }
 0x52a   : > { %5728 = vst [vmem:[%s9480_s16 + $0x78] sm:$0xff] %v5696_v25 }
 0x52b   : > { %5726 = vst [vmem:[%s9480_s16 + $0x68] sm:$0xff] %v5694_v20  ;;  %v7276_v9 = vpop.f32.mrb[80].mxu0 }
 0x52c   : > { %v7355_v44 = vadd.f32 %v9475_v49, %v7276_v9  ;;  %v5586_v51 = vpop.f32.mrb[81].mxu0 }
 0x52d   : > { %v7357_v37 = vadd.f32 %v9475_v49, %v5586_v51  ;;  %v7277_v48 = vpop.f32.mrb[82].mxu0 }
 0x52e   : > { %v5699_v40 = vmax.f32 %v7355_v44, 0.0  ;;  %v7359_v55 = vadd.f32 %v9475_v49, %v7277_v48  ;;  %v5589_v15 = vpop.f32.mrb[83].mxu0 }
 0x52f   : > { %v5697_v22 = vmax.f32 %v7357_v37, 0.0  ;;  %v7361_v58 = vadd.f32 %v9475_v49, %v5589_v15 }
 0x530   : > { %5731 = vst [vmem:[%s9480_s16 + $0x90] sm:$0xff] %v5699_v40  ;;  %v5700_v0 = vmax.f32 %v7359_v55, 0.0 }
 0x531   : > { %5729 = vst [vmem:[%s9480_s16 + $0x80] sm:$0xff] %v5697_v22  ;;  %v5698_v24 = vmax.f32 %v7361_v58, 0.0 }
 0x532   : > { %5732 = vst [vmem:[%s9480_s16 + $0x98] sm:$0xff] %v5700_v0 }
 0x533   : > { %5730 = vst [vmem:[%s9480_s16 + $0x88] sm:$0xff] %v5698_v24  ;;  %v7280_v41 = vpop.f32.mrb[84].mxu0 }
 0x534   : > { %v7363_v19 = vadd.f32 %v9475_v49, %v7280_v41  ;;  %v5602_v18 = vpop.f32.mrb[85].mxu0 }
 0x535   : > { %v7365_v12 = vadd.f32 %v9475_v49, %v5602_v18  ;;  %v7281_v35 = vpop.f32.mrb[86].mxu0 }
 0x536   : > { %v5703_v57 = vmax.f32 %v7363_v19, 0.0  ;;  %v7367_v43 = vadd.f32 %v9475_v49, %v7281_v35  ;;  %v5605_v27 = vpop.f32.mrb[87].mxu0 }
 0x537   : > { %v5701_v16 = vmax.f32 %v7365_v12, 0.0  ;;  %v7369_v2 = vadd.f32 %v9475_v49, %v5605_v27 }
 0x538   : > { %5735 = vst [vmem:[%s9480_s16 + $0xb0] sm:$0xff] %v5703_v57  ;;  %v5704_v36 = vmax.f32 %v7367_v43, 0.0 }
 0x539   : > { %5733 = vst [vmem:[%s9480_s16 + $0xa0] sm:$0xff] %v5701_v16  ;;  %v5702_v54 = vmax.f32 %v7369_v2, 0.0 }
 0x53a   : > { %5736 = vst [vmem:[%s9480_s16 + $0xb8] sm:$0xff] %v5704_v36 }
 0x53b   : > { %5734 = vst [vmem:[%s9480_s16 + $0xa8] sm:$0xff] %v5702_v54  ;;  %v7284_v7 = vpop.f32.mrb[88].mxu0 }
 0x53c   : > { %v7371_v21 = vadd.f32 %v9475_v49, %v7284_v7  ;;  %v5618_v39 = vpop.f32.mrb[89].mxu0 }
 0x53d   : > { %v7373_v1 = vadd.f32 %v9475_v49, %v5618_v39  ;;  %v7285_v3 = vpop.f32.mrb[90].mxu0 }
 0x53e   : > { %v5707_v59 = vmax.f32 %v7371_v21, 0.0  ;;  %v7375_v50 = vadd.f32 %v9475_v49, %v7285_v3  ;;  %v5621_v8 = vpop.f32.mrb[91].mxu0 }
 0x53f   : > { %v5705_v4 = vmax.f32 %v7373_v1, 0.0  ;;  %v7377_v6 = vadd.f32 %v9475_v49, %v5621_v8 }
 0x540   : > { %5739 = vst [vmem:[%s9480_s16 + $0xd0] sm:$0xff] %v5707_v59  ;;  %v5708_v5 = vmax.f32 %v7375_v50, 0.0 }
 0x541   : > { %5737 = vst [vmem:[%s9480_s16 + $0xc0] sm:$0xff] %v5705_v4  ;;  %v5706_v60 = vmax.f32 %v7377_v6, 0.0 }
 0x542   : > { %5740 = vst [vmem:[%s9480_s16 + $0xd8] sm:$0xff] %v5708_v5 }
 0x543   : > { %5738 = vst [vmem:[%s9480_s16 + $0xc8] sm:$0xff] %v5706_v60  ;;  %v7288_v53 = vpop.f32.mrb[92].mxu0 }
 0x544   : > { %v7379_v11 = vadd.f32 %v9475_v49, %v7288_v53  ;;  %v5634_v14 = vpop.f32.mrb[93].mxu0 }
 0x545   : > { %v7381_v62 = vadd.f32 %v9475_v49, %v5634_v14  ;;  %v7289_v61 = vpop.f32.mrb[94].mxu0 }
 0x546   : > { %v5711_v38 = vmax.f32 %v7379_v11, 0.0  ;;  %v7383_v23 = vadd.f32 %v9475_v49, %v7289_v61  ;;  %v5637_v13 = vpop.f32.mrb[95].mxu0 }
 0x547   : > { %v5709_v31 = vmax.f32 %v7381_v62, 0.0  ;;  %v7385_v34 = vadd.f32 %v9475_v49, %v5637_v13 }
 0x548   : > { %5743 = vst [vmem:[%s9480_s16 + $0xf0] sm:$0xff] %v5711_v38  ;;  %v5712_v63 = vmax.f32 %v7383_v23, 0.0 }
 0x549   : > { %5741 = vst [vmem:[%s9480_s16 + $0xe0] sm:$0xff] %v5709_v31  ;;  %v5710_v10 = vmax.f32 %v7385_v34, 0.0 }
 0x54a   : > { %5744 = vst [vmem:[%s9480_s16 + $0xf8] sm:$0xff] %v5712_v63 }
 0x54b   : > { %5742 = vst [vmem:[%s9480_s16 + $0xe8] sm:$0xff] %v5710_v10 }
 0x54c   : > { %8019 = shalt.err (!%p8016_p13)
}
 0x54d   : > { %s8020_s9 = scalar_lea.hbm %s9544_s17, 4096  ;;  %s8024_s16 = scalar_lea.hbm %s9867_s15, 8192 }
 0x54e   : > { %p8021_p9 = scmp.ne.s32.totalorder %s9544_s17, %s8020_s9  ;;  %p8025_p4 = scmp.lt.u32.totalorder %s9544_s17, %s9867_s15 }
 0x54f   : > { %p8026_p8 = scmp.lt.u32.totalorder %s8024_s16, %s8020_s9  ;;  %p8028_p3 = scmp.lt.u32.totalorder %s8020_s9, %s9544_s17 }
 0x550   : > { %p8022_p0 = pnand %p8021_p9, %p8316_p10 }
 0x551   : > { %p8027_p6 = por %p8026_p8, %p8025_p4 }
 0x552   : > { %p8023_p11 = pneg %p8022_p0 }
 0x553   : > { %p8029_p5 = por %p8028_p3, %p8027_p6 }
 0x555   : > { %p8030_p7 = pnand %p8029_p5, %p8023_p11 }
 0x557   : > { %8033 = shalt.err (!%p8030_p7)
}
 0x558   : > { %s8093_s29 = smov 128   ;;  %s8094_s25 = smov 8  }
 0x559   : > { %7660 = dma.vmem_to_hbm [thread:$0]  (%p8316_p10), %s9546_s21, 4096, %s9544_s17, %s5746_s13, %s8093_s29, %s8093_s29, %s8094_s25  }
 0x55a PF: > { %s9868_s26 = sld [smem:[#allocation18_spill]]  ;;  %s9869_s19 = sld [smem:[#allocation19_spill]] }
 0x55b   : > { %p9871_p1 = scmp.ge.s32.totalorder %s8080_s12, 2 }
 0x560   : > { %s5774_s22 = sand.u32 1, %s9868_s26   ;;  %p9870_p12 = scmp.ne.s32.totalorder %s9869_s19, 0 }
 0x561   : > { %s5775_s9 = scalar_lea.sflag [#allocation6], %s5774_s22 }
 0x562   : > { %p7680_p2 = pnand %p9871_p1, %p9870_p12 }
 0x564   : > { %8063 = dma.done.wait (!%p7680_p2), %s5775_s9, 4096  }
 0x565   : > { %8065 = vsyncadd (!%p7680_p2), %s5775_s9, 4294963200  ;;  %p24_p13 = scmp.ge.s32.totalorder %s8306_s14, 4   ;;  %s9872_s30 = smov %s8072_s10 }
 0x566   : > { %s9873_s10 = smov %s8076_s11  ;;  %s9874_s11 = smov %s8322_s28 }
 0x567   : > { %s9875_s12 = smov %s8306_s14  ;;  %26 = sbr.rel (!%p24_p13) target bundleno = 9 (0x9), region = 125 }
 0x56e   :  { %5780 = vsyncpa [#allocation5], 1 }
 0x56f   :  { %5782 = vsyncpa [#allocation5 + $0x1], 1 }
 0x570   :  { %5783 = vsyncpa [#allocation8], 1 }
 0x571   :  { %5784 = vsyncpa [#allocation11], 1 }
 0x572   :  { %5785 = vsyncpa [#allocation6], 1 }
 0x573   :  { %5787 = vsyncpa [#allocation6 + $0x1], 1 }

</bundles_post_ra>
